<compile_context>
chip_gen: v7x
topology: tpu7x:2x2x1
jax: 0.10.0
libtpu: 0.0.40
codegen_flags: <defaults>
</compile_context>

<pallas_src>
import jax
import jax.numpy as jnp
import numpy as np
from jax.experimental import pallas as pl
from jax.experimental.pallas import tpu as pltpu

NEG_SLOPE = 0.01    # torch.nn.LeakyReLU default
NORM_EPS = 1e-12    # torch.nn.functional.normalize default eps


def _leaky_relu(x):
    return jnp.where(x > 0, x, NEG_SLOPE * x)


# --------------------------------------------------------------------------------------
# Kernel 1: per-row-tile fused   FC_final -> LeakyReLU -> L2-normalize -> imc FC
# --------------------------------------------------------------------------------------
def _factor_kernel(x_ref, wf_ref, bf_ref, wd_ref, bd_ref, out_ref):
    # x_ref: (tile, fin) f32;  wf: (fin, dfinal);  wd: (dfinal, dim_pred)
    h = jnp.dot(x_ref[...], wf_ref[...], preferred_element_type=jnp.float32) + bf_ref[...]
    h = _leaky_relu(h)
    ss = jnp.sum(h * h, axis=-1, keepdims=True)
    h = h / jnp.maximum(jnp.sqrt(ss), NORM_EPS)          # F.normalize(dim=1, eps=1e-12)
    out_ref[...] = jnp.dot(h, wd_ref[...], preferred_element_type=jnp.float32) + bd_ref[...]


def _factor(x, wf, bf, wd, bd, *, tile_rows=256, vmem_limit_bytes=32 * 1024 * 1024):
    """Returns (x -> FC_final -> LeakyReLU -> normalize -> imc FC), shape (n, dim_pred), f32."""
    n, fin = x.shape
    dfinal = wf.shape[1]
    dpred = wd.shape[1]

    n_pad = tile_rows * pl.cdiv(n, tile_rows)
    if n_pad != n:
        x = jnp.pad(x, ((0, n_pad - n), (0, 0)))

    full = lambda i: (0, 0)
    out = pl.pallas_call(
        _factor_kernel,
        out_shape=jax.ShapeDtypeStruct((n_pad, dpred), jnp.float32),
        grid_spec=pltpu.PrefetchScalarGridSpec(
            num_scalar_prefetch=0,
            grid=(n_pad // tile_rows,),
            in_specs=[
                pl.BlockSpec((tile_rows, fin), lambda i: (i, 0)),  # row tile
                pl.BlockSpec((fin, dfinal), full),                 # W_final (resident)
                pl.BlockSpec((1, dfinal), full),                   # b_final
                pl.BlockSpec((dfinal, dpred), full),               # W_imc  (resident)
                pl.BlockSpec((1, dpred), full),                    # b_imc
            ],
            out_specs=pl.BlockSpec((tile_rows, dpred), lambda i: (i, 0)),
        ),
        compiler_params=pltpu.CompilerParams(
            dimension_semantics=("parallel",),
            vmem_limit_bytes=vmem_limit_bytes),
    )(x, wf, bf.reshape(1, dfinal), wd, bd.reshape(1, dpred))
    return out[:n]


# --------------------------------------------------------------------------------------
# Kernel 2: tiled reconstruction  recon = A @ B^T  fused with the masked SSE loss
# --------------------------------------------------------------------------------------
def _recon_loss_kernel(a_ref, bt_ref, cpi_ref, mask_ref, recon_ref, loss_ref):
    # a_ref: (tm, dpred) bf16 (resident across the inner protein sweep)
    # bt_ref: (dpred, tn) bf16  -> lane-dense (tm, tn) f32 tile straight off the MXU.
    acc = jnp.dot(a_ref[...], bt_ref[...], preferred_element_type=jnp.float32)
    recon_ref[...] = acc

    # Fused masked squared-error partial: avoids a second HBM pass over recon.
    tmp = mask_ref[...] * (acc - cpi_ref[...])
    part = jnp.sum(tmp * tmp)
    # Broadcast the scalar over a dense (8,128) tile (unmasked store path); the wrapper
    # reads [..., 0, 0].
    loss_ref[...] = jnp.broadcast_to(part, (1, 1, 8, 128)).astype(jnp.float32)


def pna_imc_head(compound_feat, protein_feat, cpi, cpi_mask, params,
                 *, tm=256, tn=512, row_tile=256,
                 factor_dtype=jnp.bfloat16,
                 vmem_limit_bytes=32 * 1024 * 1024):
    """Decoder head of PNA_IMC_Model_without_IMC.

    compound_feat: (n_compound, feat)   post-encoder compound features
    protein_feat : (n_protein,  feat)   post-encoder protein features
    cpi          : (n_compound, n_protein)  CPI (float)
    cpi_mask     : (n_compound, n_protein)  CPI_train_mask
    params = (W_final_c, b_final_c, W_final_p, b_final_p, W_fc1, b_fc1, W_fc2, b_fc2)
             with weights in (in, out) orientation.
    Returns (CPI_reconstruct_loss, CPI_reconstruct).
    """
    wfc, bfc, wfp, bfp, w1, b1, w2, b2 = params
    n_c = compound_feat.shape[0]
    n_p = protein_feat.shape[0]
    dim_pred = w1.shape[1]

    # ---- stage A: per-entity factors (f32 math; tiny matrices) ----
    a = _factor(compound_feat, wfc, bfc, w1, b1,
                tile_rows=row_tile, vmem_limit_bytes=vmem_limit_bytes)        # (n_c, dpred)
    b = _factor(protein_feat, wfp, bfp, w2, b2,
                tile_rows=row_tile, vmem_limit_bytes=vmem_limit_bytes)        # (n_p, dpred)

    # bf16 MXU inputs (f32 accumulation); pre-transpose the protein factor so the
    # reconstruction tile has the protein axis on lanes (lane-dense stores).
    a = a.astype(factor_dtype)
    bt = b.T.astype(factor_dtype)                                             # (dpred, n_p)

    # ---- padding (mask/CPI padding is zero -> no loss contribution; sliced off below) ----
    nc_pad = tm * pl.cdiv(n_c, tm)
    np_pad = tn * pl.cdiv(n_p, tn)
    if nc_pad != n_c:
        a = jnp.pad(a, ((0, nc_pad - n_c), (0, 0)))
    if np_pad != n_p:
        bt = jnp.pad(bt, ((0, 0), (0, np_pad - n_p)))
    cpi_f = cpi.astype(jnp.float32)
    mask_f = cpi_mask.astype(jnp.float32)
    if (nc_pad, np_pad) != (n_c, n_p):
        cpi_f = jnp.pad(cpi_f, ((0, nc_pad - n_c), (0, np_pad - n_p)))
        mask_f = jnp.pad(mask_f, ((0, nc_pad - n_c), (0, np_pad - n_p)))

    gi, gj = nc_pad // tm, np_pad // tn

    recon_pad, loss_parts = pl.pallas_call(
        _recon_loss_kernel,
        out_shape=(
            jax.ShapeDtypeStruct((nc_pad, np_pad), jnp.float32),
            jax.ShapeDtypeStruct((gi, gj, 8, 128), jnp.float32),
        ),
        grid_spec=pltpu.PrefetchScalarGridSpec(
            num_scalar_prefetch=0,
            grid=(gi, gj),
            in_specs=[
                pl.BlockSpec((tm, dim_pred), lambda i, j: (i, 0)),   # compound factor (resident over j)
                pl.BlockSpec((dim_pred, tn), lambda i, j: (0, j)),   # protein factor^T
                pl.BlockSpec((tm, tn), lambda i, j: (i, j)),         # CPI tile
                pl.BlockSpec((tm, tn), lambda i, j: (i, j)),         # CPI_train_mask tile
            ],
            out_specs=(
                pl.BlockSpec((tm, tn), lambda i, j: (i, j)),                 # recon tile
                pl.BlockSpec((1, 1, 8, 128), lambda i, j: (i, j, 0, 0)),     # per-tile loss partial
            ),
        ),
        compiler_params=pltpu.CompilerParams(
            dimension_semantics=("parallel", "parallel"),
            vmem_limit_bytes=vmem_limit_bytes),
    )(a, bt, cpi_f, mask_f)

    loss = jnp.sum(loss_parts[:, :, 0, 0])
    return loss, recon_pad[:n_c, :n_p]


# --------------------------------------------------------------------------------------
# Plain-JAX f32 reference mirroring the PyTorch forward (decoder head + loss)
# --------------------------------------------------------------------------------------
def _reference(compound_feat, protein_feat, cpi, cpi_mask, params):
    wfc, bfc, wfp, bfp, w1, b1, w2, b2 = params

    c = _leaky_relu(compound_feat @ wfc + bfc)
    c = c / jnp.maximum(jnp.sqrt(jnp.sum(c * c, axis=1, keepdims=True)), NORM_EPS)
    p = _leaky_relu(protein_feat @ wfp + bfp)
    p = p / jnp.maximum(jnp.sqrt(jnp.sum(p * p, axis=1, keepdims=True)), NORM_EPS)

    a = c @ w1 + b1
    b = p @ w2 + b2
    recon = a @ b.T
    tmp = cpi_mask * (recon - cpi)
    return jnp.sum(tmp * tmp), recon


if __name__ == "__main__":
    # Small shapes consistent with the module (post-PNA entity features have dim
    # 2*pna_hidden_dim); ragged vs. the (256, 512) tiles to exercise padding + multi-tile.
    n_compound, n_protein = 300, 600
    dim_hidden = 64
    feat_dim = 2 * dim_hidden          # concat([entity, entity_], dim=1)
    dim_compound_final = 64            # args.imc_compound_dim
    dim_protein_final = 64             # args.imc_protein_dim
    dim_pred = 32                      # args.imc_k

    key = jax.random.PRNGKey(0)
    ks = jax.random.split(key, 12)

    compound_feat = jax.random.normal(ks[0], (n_compound, feat_dim), jnp.float32)
    protein_feat = jax.random.normal(ks[1], (n_protein, feat_dim), jnp.float32)
    cpi = (jax.random.uniform(ks[2], (n_compound, n_protein)) > 0.8).astype(jnp.float32)
    cpi_mask = (jax.random.uniform(ks[3], (n_compound, n_protein)) > 0.5).astype(jnp.float32)

    def xavier(k, fan_in, fan_out):
        bound = float(np.sqrt(6.0 / (fan_in + fan_out)))
        return jax.random.uniform(k, (fan_in, fan_out), jnp.float32, -bound, bound)

    wfc = xavier(ks[4], feat_dim, dim_compound_final)
    bfc = 0.01 * jax.random.normal(ks[5], (dim_compound_final,), jnp.float32)
    wfp = xavier(ks[6], feat_dim, dim_protein_final)
    bfp = 0.01 * jax.random.normal(ks[7], (dim_protein_final,), jnp.float32)
    w1 = xavier(ks[8], dim_compound_final, dim_pred)
    b1 = 0.01 * jax.random.normal(ks[9], (dim_pred,), jnp.float32)
    w2 = xavier(ks[10], dim_protein_final, dim_pred)
    b2 = 0.01 * jax.random.normal(ks[11], (dim_pred,), jnp.float32)
    params = (wfc, bfc, wfp, bfp, w1, b1, w2, b2)

    loss, recon = pna_imc_head(compound_feat, protein_feat, cpi, cpi_mask, params,
                               tm=256, tn=512)
    loss = jax.block_until_ready(loss)
    recon = jax.block_until_ready(recon)

    ref_loss, ref_recon = _reference(compound_feat, protein_feat, cpi, cpi_mask, params)

    # bf16 MXU factors (f32 accumulation) -> compare against the f32 reference at bf16 tolerance.
    np.testing.assert_allclose(np.asarray(recon), np.asarray(ref_recon), rtol=2e-2, atol=2e-2)
    np.testing.assert_allclose(float(loss), float(ref_loss), rtol=2e-2)

    print("KERNEL_OK")
</pallas_src>

<mosaic_0001>
module attributes {stable_mosaic.version = 11 : i64} {
  func.func @_factor_kernel(%arg0: i32, %arg1: memref<256x128xf32, #tpu.memory_space<vmem>>, %arg2: memref<128x64xf32, #tpu.memory_space<vmem>>, %arg3: memref<1x64xf32, #tpu.memory_space<vmem>>, %arg4: memref<64x32xf32, #tpu.memory_space<vmem>>, %arg5: memref<1x32xf32, #tpu.memory_space<vmem>>, %arg6: memref<256x32xf32, #tpu.memory_space<vmem>>) attributes {dimension_semantics = [#tpu.dimension_semantics<parallel>], iteration_bounds = array<i64: 2>, scalar_prefetch = 0 : i64, scratch_operands = 0 : i64, tpu.core_type = #tpu.core_type<tc>, window_params = [{transform_indices = @transform_0, window_bounds = array<i64: 256, 128>}, {pipeline_mode = #tpu.pipeline_mode<synchronous>, transform_indices = @transform_1, window_bounds = array<i64: 128, 64>}, {pipeline_mode = #tpu.pipeline_mode<synchronous>, transform_indices = @transform_2, window_bounds = array<i64: 1, 64>}, {pipeline_mode = #tpu.pipeline_mode<synchronous>, transform_indices = @transform_3, window_bounds = array<i64: 64, 32>}, {pipeline_mode = #tpu.pipeline_mode<synchronous>, transform_indices = @transform_4, window_bounds = array<i64: 1, 32>}, {transform_indices = @transform_5, window_bounds = array<i64: 256, 32>}]} {
    %c0 = arith.constant 0 : index
    %c0_0 = arith.constant 0 : index
    %0 = vector.load %arg1[%c0, %c0_0] : memref<256x128xf32, #tpu.memory_space<vmem>>, vector<256x128xf32>
    %c0_1 = arith.constant 0 : index
    %c0_2 = arith.constant 0 : index
    %1 = vector.load %arg2[%c0_1, %c0_2] : memref<128x64xf32, #tpu.memory_space<vmem>>, vector<128x64xf32>
    %cst = arith.constant dense<0.000000e+00> : vector<256x64xf32>
    %2 = tpu.matmul %0, %1, %cst {dimension_numbers = #tpu.dot_dimension_numbers<[1], [0], [0], [1], [0, 0, 1, 1], [], []>} : vector<256x128xf32>, vector<128x64xf32>, vector<256x64xf32> -> vector<256x64xf32>
    %c0_3 = arith.constant 0 : index
    %c0_4 = arith.constant 0 : index
    %3 = vector.load %arg3[%c0_3, %c0_4] : memref<1x64xf32, #tpu.memory_space<vmem>>, vector<1x64xf32>
    %4 = vector.broadcast %3 : vector<1x64xf32> to vector<256x64xf32>
    %5 = arith.addf %2, %4 : vector<256x64xf32>
    %cst_5 = arith.constant 0.000000e+00 : f32
    %6 = vector.broadcast %cst_5 : f32 to vector<256x64xf32>
    %7 = arith.cmpf ogt, %5, %6 : vector<256x64xf32>
    %cst_6 = arith.constant 0.00999999977 : f32
    %8 = vector.broadcast %cst_6 : f32 to vector<256x64xf32>
    %9 = arith.mulf %8, %5 : vector<256x64xf32>
    %10 = arith.select %7, %5, %9 : vector<256x64xi1>, vector<256x64xf32>
    %11 = arith.mulf %10, %10 : vector<256x64xf32>
    %cst_7 = arith.constant dense<0.000000e+00> : vector<256xf32>
    %12 = vector.multi_reduction <add>, %11, %cst_7 [1] : vector<256x64xf32> to vector<256xf32>
    %13 = vector.shape_cast %12 : vector<256xf32> to vector<256x1xf32>
    %14 = math.sqrt %13 : vector<256x1xf32>
    %cst_8 = arith.constant 9.99999996E-13 : f32
    %15 = vector.broadcast %cst_8 : f32 to vector<256x1xf32>
    %16 = arith.maximumf %14, %15 : vector<256x1xf32>
    %17 = vector.broadcast %16 : vector<256x1xf32> to vector<256x64xf32>
    %18 = arith.divf %10, %17 : vector<256x64xf32>
    %c0_9 = arith.constant 0 : index
    %c0_10 = arith.constant 0 : index
    %19 = vector.load %arg4[%c0_9, %c0_10] : memref<64x32xf32, #tpu.memory_space<vmem>>, vector<64x32xf32>
    %cst_11 = arith.constant dense<0.000000e+00> : vector<256x32xf32>
    %20 = tpu.matmul %18, %19, %cst_11 {dimension_numbers = #tpu.dot_dimension_numbers<[1], [0], [0], [1], [0, 0, 1, 1], [], []>} : vector<256x64xf32>, vector<64x32xf32>, vector<256x32xf32> -> vector<256x32xf32>
    %c0_12 = arith.constant 0 : index
    %c0_13 = arith.constant 0 : index
    %21 = vector.load %arg5[%c0_12, %c0_13] : memref<1x32xf32, #tpu.memory_space<vmem>>, vector<1x32xf32>
    %22 = vector.broadcast %21 : vector<1x32xf32> to vector<256x32xf32>
    %23 = arith.addf %20, %22 : vector<256x32xf32>
    %c0_14 = arith.constant 0 : index
    %c0_15 = arith.constant 0 : index
    %24 = vector.load %arg6[%c0_14, %c0_15] : memref<256x32xf32, #tpu.memory_space<vmem>>, vector<256x32xf32>
    tpu.vector_store %arg6[%c0_14, %c0_15], %23 {strides = array<i32>} : memref<256x32xf32, #tpu.memory_space<vmem>>, vector<256x32xf32>,
    return
  }
  func.func @transform_0(%arg0: i32) -> (i32, i32) {
    %c0_i32 = arith.constant 0 : i32
    %c0_i32_0 = arith.constant 0 : i32
    return %arg0, %c0_i32 : i32, i32
  }
  func.func @transform_1(%arg0: i32) -> (i32, i32) {
    %c0_i32 = arith.constant 0 : i32
    %c0_i32_0 = arith.constant 0 : i32
    %c0_i32_1 = arith.constant 0 : i32
    return %c0_i32, %c0_i32_0 : i32, i32
  }
  func.func @transform_2(%arg0: i32) -> (i32, i32) {
    %c0_i32 = arith.constant 0 : i32
    %c0_i32_0 = arith.constant 0 : i32
    %c0_i32_1 = arith.constant 0 : i32
    return %c0_i32, %c0_i32_0 : i32, i32
  }
  func.func @transform_3(%arg0: i32) -> (i32, i32) {
    %c0_i32 = arith.constant 0 : i32
    %c0_i32_0 = arith.constant 0 : i32
    %c0_i32_1 = arith.constant 0 : i32
    return %c0_i32, %c0_i32_0 : i32, i32
  }
  func.func @transform_4(%arg0: i32) -> (i32, i32) {
    %c0_i32 = arith.constant 0 : i32
    %c0_i32_0 = arith.constant 0 : i32
    %c0_i32_1 = arith.constant 0 : i32
    return %c0_i32, %c0_i32_0 : i32, i32
  }
  func.func @transform_5(%arg0: i32) -> (i32, i32) {
    %c0_i32 = arith.constant 0 : i32
    %c0_i32_0 = arith.constant 0 : i32
    return %arg0, %c0_i32 : i32, i32
  }
}

</mosaic_0001>

<bundles_post_ra>
// kernel: tpu_custom_call.1
= control target key start
LH: loop header
LB: loop body
LE: loop exit
PB: predicated region body
PF: predicated region fallthrough
CT: control target
= control target key end

     0   :  { %10 = vsyncpa [#allocation3], 0  ;;  %s3014_s0 = inlined_call_operand.hbm [shape: f32[512,128], index: 0, kind: input, shape index: {}]   ;;  %s3015_s1 = inlined_call_operand.vmem [shape: f32[128,64], index: 1, kind: input, shape index: {}]   ;;  %s3016_s2 = inlined_call_operand.vmem [shape: f32[1,64], index: 2, kind: input, shape index: {}]   ;;  %s3017_s3 = inlined_call_operand.vmem [shape: f32[64,32], index: 3, kind: input, shape index: {}]   ;;  %s3018_s4 = inlined_call_operand.vmem [shape: f32[1,32], index: 4, kind: input, shape index: {}]   ;;  %s3019_s5 = inlined_call_operand.vmem [shape: f32[512,32], index: 5, kind: output, shape index: {}]  }
   0x1   :  { %12 = vsyncpa [#allocation3 + $0x1], 0  ;;  %s2104_s18 = smov 0   ;;  %s2106_s19 = smov 0  }
   0x2   :  { %s2108_s20 = smov 0   ;;  %s2110_s21 = smov 0  }
   0x3 LB: > { %s1508_s22 = sadd.s32 4294967295, %s2069_s21   ;;  %s2124_s23 = sadd.s32 1, %s2069_s21   ;;  %s2069_s21 = sphi %s2110_s21, %s3026_s21   ;;  %s2065_s20 = sphi %s2108_s20, %s3025_s20   ;;  %s2061_s19 = sphi %s2106_s19, %s3024_s19   ;;  %s2057_s18 = sphi %s2104_s18, %s3023_s18  }
   0x4   : > { %s22_s24 = ssub.s32 %s2069_s21, %s2124_s23  ;;  %s25_s25 = sadd.s32 1, %s2065_s20 }
   0x5   : > { %p23_p0 = scmp.eq.s32.totalorder %s22_s24, 0  ;;  %p32_p1 = scmp.ne.s32.totalorder %s2065_s20, %s2061_s19 }
   0x6   : > { %p33_p2 = scmp.eq.s32.totalorder %s2069_s21, 0  ;;  %p38_p3 = scmp.ne.s32.totalorder %s2061_s19, %s2057_s18 }
   0x7   : > { %s2134_s26 = scalar_select %p23_p0, %s2065_s20, %s25_s25  }
   0x8   : > { %p34_p4 = por %p33_p2, %p32_p1  ;;  %p39_p5 = scmp.eq.s32.totalorder %s1508_s22, 0 }
   0x9   : > { %p1842_p6 = scmp.lt.s32.totalorder %s2069_s21, 2  ;;  %s184_s28 = sand.u32 1, %s2065_s20  }
   0xa   : > { %p2139_p7 = por %p39_p5, %p38_p3  ;;  %s1512_s29 = sshll.u32 %s184_s28, 8 }
   0xb   : > { %s1555_s30 = sshll.u32 %s2069_s21, 12  ;;  %s188_s9 = scalar_lea.vmem [#allocation2], %s1512_s29 }
   0xc   : > { %s2148_s8 = scalar_lea.hbm %s3014_s0, %s1555_s30  ;;  %s195_s10 = sshll.u32 %s188_s9, 4  ;;  %s2150_s10 = int_to_ptr.vmem [resolvable:$true] %s195_s10 }
   0xd   : > { %p2152_p8 = pnand %p1842_p6, %p34_p4  ;;  %s2157_s12 = scalar_lea.sflag [#allocation3], %s184_s28 }
   0xe   : > { %s2005_s13 = scalar_lea.hbm %s2148_s8, 4096  ;;  %s2010_s16 = scalar_lea.hbm %s3014_s0, 8192 }
   0xf   : > { %p2006_p10 = scmp.ne.s32.totalorder %s2148_s8, %s2005_s13  ;;  %p2007_p11 = pneg %p2152_p8 }
  0x10   : > { %p2011_p0 = scmp.lt.u32.totalorder %s2148_s8, %s3014_s0  ;;  %p2012_p1 = scmp.lt.u32.totalorder %s2010_s16, %s2005_s13 }
  0x11   : > { %p2008_p12 = pnand %p2007_p11, %p2006_p10  ;;  %p2014_p3 = scmp.lt.u32.totalorder %s2005_s13, %s2148_s8 }
  0x12   : > { %p2013_p2 = por %p2012_p1, %p2011_p0 }
  0x13   : > { %p2009_p13 = pneg %p2008_p12 }
  0x14   : > { %p2015_p4 = por %p2014_p3, %p2013_p2 }
  0x16   : > { %p2016_p5 = pnand %p2015_p4, %p2009_p13 }
  0x18   : > { %2019 = shalt.err (!%p2016_p5)
}
  0x19   : > { %s2020_s24 = scalar_lea.vmem %s2150_s10, 4096  ;;  %s2071_s25 = smov [#allocation2]  }
  0x1a   : > { %p2021_p6 = scmp.ne.s32.totalorder %s2150_s10, %s2020_s24  ;;  %s2025_s28 = sshll.u32 %s2071_s25, 4  ;;  %s2026_s28 = int_to_ptr.vmem [resolvable:$false] %s2025_s28 }
  0x1b   : > { %s2027_s29 = scalar_lea.vmem %s2026_s28, 8192  ;;  %p2028_p9 = scmp.lt.s32.totalorder %s2150_s10, %s2026_s28 }
  0x1c   : > { %p2023_p10 = pnand %p2021_p6, %p2007_p11  ;;  %p2029_p0 = scmp.lt.s32.totalorder %s2027_s29, %s2020_s24 }
  0x1e   : > { %p2024_p12 = pneg %p2023_p10  ;;  %p2030_p1 = por %p2029_p0, %p2028_p9 }
  0x20   : > { %p2031_p2 = pnand %p2030_p1, %p2024_p12 }
  0x22   : > { %2034 = shalt.err (!%p2031_p2)
}
  0x23   : > { %s2072_s30 = smov 128   ;;  %s2073_s6 = smov 8  }
  0x24   : > { %1841 = dma.hbm_to_vmem [thread:$0]  (!%p2152_p8), %s2148_s8, 4096, %s2150_s10, %s2157_s12, %s2072_s30, %s2072_s30, %s2073_s6  }
  0x25   : > { %p203_p11 = scmp.lt.s32.totalorder %s2069_s21, 3  ;;  %p3022_p13 = scmp.ge.s32.totalorder %s2069_s21, 1 }
  0x27   : > { %p204_p3 = pnand %p3022_p13, %p203_p11 }
  0x28   : > { %s209_s7 = sand.u32 (!%p204_p3), 1, %s2061_s19  }
  0x29   : > { %207 = sbr.rel (%p204_p3) target bundleno = 769 (0x301), region = 40  ;;  %s1516_s9 = sshll.u32 (!%p204_p3), %s209_s7, 8 }
  0x2a   : > { %s210_s13 = scalar_lea.sflag (!%p204_p3), [#allocation3], %s209_s7  ;;  %s2189_s14 = scalar_lea.vmem (!%p204_p3), [#allocation2], %s1516_s9 }
  0x30   : > { %2052 = dma.done.wait (%p2139_p7), %s210_s13, 4096  }
  0x31   : > { %2054 = vsyncadd (%p2139_p7), %s210_s13, 4294963200  ;;  %v279_v0 = vld [vmem:[%s3015_s1] sm:$0xff]  ;;  %v280_v1 = vld [vmem:[%s3015_s1 + $0x8] sm:$0xff]  ;;  %vm655_vm2 = vcmask 523264   ;;  %s1517_s30 = sshll.u32 %s1508_s22, 5 }
  0x32   : > { %v281_v2 = vld [vmem:[%s3015_s1 + $0x10] sm:$0xff]  ;;  %v1788_v3 = vpack.c.bf16 %v280_v1, %v279_v0  ;;  %v282_v4 = vld [vmem:[%s3015_s1 + $0x18] sm:$0xff]  ;;  %v283_v6 = vld [vmem:[%s3015_s1 + $0x20] sm:$0xff]  ;;  %p242_p7 = scmp.lt.s32.totalorder %s1517_s30, 63 }
  0x33   : > { %v1792_v5 = vpack.c.bf16 %v282_v4, %v281_v2  ;;  %v284_v7 = vld [vmem:[%s3015_s1 + $0x28] sm:$0xff]  ;;  %v247_v9 = vld [vmem:[%s2189_s14] sm:$0xff]  ;;  %v285_v10 = vld [vmem:[%s3015_s1 + $0x30] sm:$0xff] }
  0x34   : > { %1789 = vmatprep.subr.bf16.mxu0 %v1788_v3  ;;  %v1796_v8 = vpack.c.bf16 %v284_v7, %v283_v6  ;;  %v286_v11 = vld [vmem:[%s3015_s1 + $0x38] sm:$0xff]  ;;  %1676 = vmatprep.mubr.f32.mxu0 %v247_v9  ;;  %v287_v13 = vld [vmem:[%s3015_s1 + $0x40] sm:$0xff]  ;;  %v288_v14 = vld [vmem:[%s3015_s1 + $0x48] sm:$0xff]  ;;  %s3028_s30 = smov (!%p242_p7, %s1517_s30), 63 }
  0x35   : > { %1791 = vmatpush3.bf16.msra.mxu0 %v1788_v3  ;;  %v1800_v12 = vpack.c.bf16 %v286_v11, %v285_v10  ;;  %v1804_v15 = vpack.c.bf16 %v288_v14, %v287_v13  ;;  %v289_v16 = vld [vmem:[%s3015_s1 + $0x50] sm:$0xff]  ;;  %v290_v17 = vld [vmem:[%s3015_s1 + $0x58] sm:$0xff]  ;;  %v291_v19 = vld [vmem:[%s3015_s1 + $0x60] sm:$0xff]  ;;  %s1518_s6 = sshll.u32 %s3028_s30, 3 }
  0x36   : > { %1793 = vmatprep.subr.bf16.mxu0 %v1792_v5  ;;  %v1808_v18 = vpack.c.bf16 %v290_v17, %v289_v16  ;;  %v292_v20 = vld [vmem:[%s3015_s1 + $0x68] sm:$0xff]  ;;  %v293_v22 = vld [vmem:[%s3015_s1 + $0x70] sm:$0xff]  ;;  %v294_v23 = vld [vmem:[%s3015_s1 + $0x78] sm:$0xff]  ;;  %s2903_s15 = scalar_lea.vmem %s3019_s5, %s1518_s6 }
  0x37   : > { %v1812_v21 = vpack.c.bf16 %v292_v20, %v291_v19  ;;  %v1816_v24 = vpack.c.bf16 %v294_v23, %v293_v22  ;;  %v248_v25 = vld [vmem:[%s2189_s14 + $0x8] sm:$0xff]  ;;  %v249_v26 = vld [vmem:[%s2189_s14 + $0x10] sm:$0xff]  ;;  %v250_v27 = vld [vmem:[%s2189_s14 + $0x18] sm:$0xff] }
  0x38   : > { %v251_v28 = vld [vmem:[%s2189_s14 + $0x20] sm:$0xff]  ;;  %v252_v29 = vld [vmem:[%s2189_s14 + $0x28] sm:$0xff]  ;;  %v253_v30 = vld [vmem:[%s2189_s14 + $0x30] sm:$0xff] }
  0x39   : > { %1795 = vmatpush3.bf16.msra.mxu0 %v1792_v5  ;;  %v254_v31 = vld [vmem:[%s2189_s14 + $0x38] sm:$0xff]  ;;  %v255_v32 = vld [vmem:[%s2189_s14 + $0x40] sm:$0xff]  ;;  %v256_v33 = vld [vmem:[%s2189_s14 + $0x48] sm:$0xff] }
  0x3a   : > { %1797 = vmatprep.subr.bf16.mxu0 %v1796_v8  ;;  %v257_v34 = vld [vmem:[%s2189_s14 + $0x50] sm:$0xff]  ;;  %v258_v35 = vld [vmem:[%s2189_s14 + $0x58] sm:$0xff]  ;;  %v259_v36 = vld [vmem:[%s2189_s14 + $0x60] sm:$0xff] }
  0x3b   : > { %v260_v37 = vld [vmem:[%s2189_s14 + $0x68] sm:$0xff]  ;;  %v261_v38 = vld [vmem:[%s2189_s14 + $0x70] sm:$0xff]  ;;  %v262_v39 = vld [vmem:[%s2189_s14 + $0x78] sm:$0xff] }
  0x3c   : > { %v263_v40 = vld [vmem:[%s2189_s14 + $0x80] sm:$0xff]  ;;  %v264_v41 = vld [vmem:[%s2189_s14 + $0x88] sm:$0xff]  ;;  %v265_v42 = vld [vmem:[%s2189_s14 + $0x90] sm:$0xff] }
  0x3d   : > { %1799 = vmatpush3.bf16.msra.mxu0 %v1796_v8  ;;  %v266_v43 = vld [vmem:[%s2189_s14 + $0x98] sm:$0xff]  ;;  %v267_v44 = vld [vmem:[%s2189_s14 + $0xa0] sm:$0xff]  ;;  %v268_v45 = vld [vmem:[%s2189_s14 + $0xa8] sm:$0xff] }
  0x3e   : > { %1801 = vmatprep.subr.bf16.mxu0 %v1800_v12  ;;  %v269_v46 = vld [vmem:[%s2189_s14 + $0xb0] sm:$0xff]  ;;  %v270_v47 = vld [vmem:[%s2189_s14 + $0xb8] sm:$0xff]  ;;  %v271_v48 = vld [vmem:[%s2189_s14 + $0xc0] sm:$0xff] }
  0x3f   : > { %v272_v49 = vld [vmem:[%s2189_s14 + $0xc8] sm:$0xff]  ;;  %v273_v50 = vld [vmem:[%s2189_s14 + $0xd0] sm:$0xff]  ;;  %v274_v51 = vld [vmem:[%s2189_s14 + $0xd8] sm:$0xff] }
  0x40   : > { %v275_v52 = vld [vmem:[%s2189_s14 + $0xe0] sm:$0xff]  ;;  %v276_v53 = vld [vmem:[%s2189_s14 + $0xe8] sm:$0xff]  ;;  %v277_v54 = vld [vmem:[%s2189_s14 + $0xf0] sm:$0xff] }
  0x41   : > { %1803 = vmatpush3.bf16.msra.mxu0 %v1800_v12  ;;  %v278_v55 = vld [vmem:[%s2189_s14 + $0xf8] sm:$0xff]  ;;  %v2278_v56 = vld [vmem:[%s3016_s2] ss:$0 sm:$0xff] }
  0x42   : > { %1805 = vmatprep.subr.bf16.mxu0 %v1804_v15 }
  0x45   : > { %1807 = vmatpush3.bf16.msra.mxu0 %v1804_v15 }
  0x46   : > { %1809 = vmatprep.subr.bf16.mxu0 %v1808_v18 }
  0x49   : > { %1811 = vmatpush3.bf16.msra.mxu0 %v1808_v18 }
  0x4a   : > { %1813 = vmatprep.subr.bf16.mxu0 %v1812_v21 }
  0x4d   : > { %1815 = vmatpush3.bf16.msra.mxu0 %v1812_v21 }
  0x4e   : > { %1817 = vmatprep.subr.bf16.mxu0 %v1816_v24 }
  0x51   : > { %1819 = vmatpush3.bf16.msra.mxu0 %v1816_v24 }
  0x54   : > { %1677 = vmatmul.mubr.f32.vlgmr.msra.gmra.mrb[0].mxu0 %v248_v25 }
  0x55   : > { %1679 = vmatprep.mubr.f32.mxu0 %v249_v26 }
  0x58   : > { %1680 = vmatmul.mubr.f32.gmra.mrb[2].mxu0 %v250_v27 }
  0x59   : > { %1682 = vmatprep.mubr.f32.mxu0 %v251_v28 }
  0x5c   : > { %1683 = vmatmul.mubr.f32.gmra.mrb[4].mxu0 %v252_v29 }
  0x5d   : > { %1685 = vmatprep.mubr.f32.mxu0 %v253_v30 }
  0x60   : > { %1686 = vmatmul.mubr.f32.gmra.mrb[6].mxu0 %v254_v31 }
  0x61   : > { %1688 = vmatprep.mubr.f32.mxu0 %v255_v32 }
  0x64   : > { %1689 = vmatmul.mubr.f32.gmra.mrb[8].mxu0 %v256_v33 }
  0x65   : > { %1691 = vmatprep.mubr.f32.mxu0 %v257_v34 }
  0x68   : > { %1692 = vmatmul.mubr.f32.gmra.mrb[10].mxu0 %v258_v35 }
  0x69   : > { %1694 = vmatprep.mubr.f32.mxu0 %v259_v36 }
  0x6c   : > { %1695 = vmatmul.mubr.f32.gmra.mrb[12].mxu0 %v260_v37 }
  0x6d   : > { %1697 = vmatprep.mubr.f32.mxu0 %v261_v38 }
  0x70   : > { %1698 = vmatmul.mubr.f32.gmra.mrb[14].mxu0 %v262_v39 }
  0x71   : > { %1700 = vmatprep.mubr.f32.mxu0 %v263_v40 }
  0x74   : > { %1701 = vmatmul.mubr.f32.gmra.mrb[16].mxu0 %v264_v41 }
  0x75   : > { %1703 = vmatprep.mubr.f32.mxu0 %v265_v42 }
  0x78   : > { %1704 = vmatmul.mubr.f32.gmra.mrb[18].mxu0 %v266_v43 }
  0x79   : > { %1706 = vmatprep.mubr.f32.mxu0 %v267_v44 }
  0x7c   : > { %1707 = vmatmul.mubr.f32.gmra.mrb[20].mxu0 %v268_v45 }
  0x7d   : > { %1709 = vmatprep.mubr.f32.mxu0 %v269_v46 }
  0x80   : > { %1710 = vmatmul.mubr.f32.gmra.mrb[22].mxu0 %v270_v47 }
  0x81   : > { %1712 = vmatprep.mubr.f32.mxu0 %v271_v48 }
  0x84   : > { %1713 = vmatmul.mubr.f32.gmra.mrb[24].mxu0 %v272_v49 }
  0x85   : > { %1715 = vmatprep.mubr.f32.mxu0 %v273_v50 }
  0x88   : > { %1716 = vmatmul.mubr.f32.gmra.mrb[26].mxu0 %v274_v51 }
  0x89   : > { %1718 = vmatprep.mubr.f32.mxu0 %v275_v52 }
  0x8c   : > { %1719 = vmatmul.mubr.f32.gmra.mrb[28].mxu0 %v276_v53 }
  0x8d   : > { %1721 = vmatprep.mubr.f32.mxu0 %v277_v54 }
  0x90   : > { %1722 = vmatmul.mubr.f32.gmra.mrb[30].mxu0 %v278_v55 }
 0x127   : > { %v1678_v57 = vpop.f32.mrb[0].mxu0 }
 0x128   : > { %v374_v58 = vadd.f32 %v1678_v57, %v2278_v56  ;;  %v368_v59 = vpop.f32.mrb[1].mxu0 }
 0x129   : > { %v369_v60 = vadd.f32 %v2278_v56, %v368_v59 }
 0x12a   : > { %vm528_vm0 = vcmp.gt.f32.partialorder %v374_v58, 0.0  ;;  %v560_v61 = vmul.f32 0.01, %v374_v58 }
 0x12b   : > { %v559_v62 = vmul.f32 0.01, %v369_v60  ;;  %v1681_v63 = vpop.f32.mrb[2].mxu0  ;;  %vm527_vm1 = vcmp.gt.f32.partialorder %v369_v60, 0.0 }
 0x12c   : > { %v384_v0 = vadd.f32 %v1681_v63, %v2278_v56  ;;  %v378_v1 = vpop.f32.mrb[3].mxu0  ;;  %v2286_v4 = vsel %vm528_vm0, %v374_v58, %v560_v61 }
 0x12d   : > { %v379_v2 = vadd.f32 %v2278_v56, %v378_v1  ;;  %v2284_v3 = vsel %vm527_vm1, %v369_v60, %v559_v62  ;;  %v624_v12 = vmul.f32 %v2286_v4, %v2286_v4 }
 0x12e   : > { %vm530_vm3 = vcmp.gt.f32.partialorder %v384_v0, 0.0  ;;  %v562_v5 = vmul.f32 0.01, %v384_v0  ;;  %v623_v6 = vmul.f32 %v2284_v3, %v2284_v3 }
 0x12f   : > { %v561_v7 = vmul.f32 0.01, %v379_v2  ;;  %v1684_v8 = vpop.f32.mrb[4].mxu0  ;;  %vm529_vm4 = vcmp.gt.f32.partialorder %v379_v2, 0.0  ;;  %v659_v23 = vsel %vm655_vm2, %v624_v12, 0.0 }
 0x130   : > { %v394_v9 = vadd.f32 %v1684_v8, %v2278_v56  ;;  %v388_v10 = vpop.f32.mrb[5].mxu0  ;;  %v656_v11 = vsel %vm655_vm2, %v623_v6, 0.0  ;;  %v2297_v15 = vsel %vm530_vm3, %v384_v0, %v562_v5 }
 0x131   : > { %v389_v13 = vadd.f32 %v2278_v56, %v388_v10  ;;  %657 = vadd.xlane.f32.xlu0 %v656_v11  ;;  %v2295_v14 = vsel %vm529_vm4, %v379_v2, %v561_v7  ;;  %v626_v24 = vmul.f32 %v2297_v15, %v2297_v15 }
 0x132   : > { %vm532_vm5 = vcmp.gt.f32.partialorder %v394_v9, 0.0  ;;  %v564_v16 = vmul.f32 0.01, %v394_v9  ;;  %v625_v17 = vmul.f32 %v2295_v14, %v2295_v14 }
 0x133   : > { %vm531_vm6 = vcmp.gt.f32.partialorder %v389_v13, 0.0  ;;  %v563_v18 = vmul.f32 0.01, %v389_v13  ;;  %v1687_v19 = vpop.f32.mrb[6].mxu0  ;;  %v665_v34 = vsel %vm655_vm2, %v626_v24, 0.0 }
 0x134   : > { %v404_v20 = vadd.f32 %v1687_v19, %v2278_v56  ;;  %v398_v21 = vpop.f32.mrb[7].mxu0  ;;  %v662_v22 = vsel %vm655_vm2, %v625_v17, 0.0  ;;  %v2309_v27 = vsel %vm532_vm5, %v394_v9, %v564_v16 }
 0x135   : > { %v399_v25 = vadd.f32 %v2278_v56, %v398_v21  ;;  %663 = vadd.xlane.f32.xlu1 %v662_v22  ;;  %660 = vadd.xlane.f32.xlu0 %v659_v23  ;;  %v2307_v26 = vsel %vm531_vm6, %v389_v13, %v563_v18  ;;  %v628_v36 = vmul.f32 %v2309_v27, %v2309_v27 }
 0x136   : > { %vm534_vm7 = vcmp.gt.f32.partialorder %v404_v20, 0.0  ;;  %v566_v28 = vmul.f32 0.01, %v404_v20  ;;  %v627_v29 = vmul.f32 %v2307_v26, %v2307_v26 }
 0x137   : > { %vm533_vm8 = vcmp.gt.f32.partialorder %v399_v25, 0.0  ;;  %v565_v30 = vmul.f32 0.01, %v399_v25  ;;  %v1690_v31 = vpop.f32.mrb[8].mxu0  ;;  %v671_v46 = vsel %vm655_vm2, %v628_v36, 0.0 }
 0x138   : > { %v414_v32 = vadd.f32 %v1690_v31, %v2278_v56  ;;  %v408_v33 = vpop.f32.mrb[9].mxu0  ;;  %v668_v35 = vsel %vm655_vm2, %v627_v29, 0.0  ;;  %v2321_v39 = vsel %vm534_vm7, %v404_v20, %v566_v28 }
 0x139   : > { %v409_v37 = vadd.f32 %v2278_v56, %v408_v33  ;;  %666 = vadd.xlane.f32.xlu1 %v665_v34  ;;  %669 = vadd.xlane.f32.xlu0 %v668_v35  ;;  %v2319_v38 = vsel %vm533_vm8, %v399_v25, %v565_v30  ;;  %v630_v48 = vmul.f32 %v2321_v39, %v2321_v39 }
 0x13a   : > { %vm536_vm9 = vcmp.gt.f32.partialorder %v414_v32, 0.0  ;;  %v568_v40 = vmul.f32 0.01, %v414_v32  ;;  %v629_v41 = vmul.f32 %v2319_v38, %v2319_v38 }
 0x13b   : > { %vm535_vm10 = vcmp.gt.f32.partialorder %v409_v37, 0.0  ;;  %v567_v42 = vmul.f32 0.01, %v409_v37  ;;  %v1693_v43 = vpop.f32.mrb[10].mxu0  ;;  %v677_v59 = vsel %vm655_vm2, %v630_v48, 0.0 }
 0x13c   : > { %v424_v44 = vadd.f32 %v1693_v43, %v2278_v56  ;;  %v418_v45 = vpop.f32.mrb[11].mxu0  ;;  %v674_v47 = vsel %vm655_vm2, %v629_v41, 0.0  ;;  %v2333_v51 = vsel %vm536_vm9, %v414_v32, %v568_v40 }
 0x13d   : > { %v419_v49 = vadd.f32 %v2278_v56, %v418_v45  ;;  %672 = vadd.xlane.f32.xlu1 %v671_v46  ;;  %675 = vadd.xlane.f32.xlu0 %v674_v47  ;;  %v2331_v50 = vsel %vm535_vm10, %v409_v37, %v567_v42  ;;  %v632_v61 = vmul.f32 %v2333_v51, %v2333_v51 }
 0x13e   : > { %vm538_vm11 = vcmp.gt.f32.partialorder %v424_v44, 0.0  ;;  %v570_v52 = vmul.f32 0.01, %v424_v44  ;;  %v631_v53 = vmul.f32 %v2331_v50, %v2331_v50 }
 0x13f   : > { %vm537_vm12 = vcmp.gt.f32.partialorder %v419_v49, 0.0  ;;  %v569_v54 = vmul.f32 0.01, %v419_v49  ;;  %v1696_v55 = vpop.f32.mrb[12].mxu0  ;;  %v683_v9 = vsel %vm655_vm2, %v632_v61, 0.0 }
 0x140   : > { %v434_v57 = vadd.f32 %v1696_v55, %v2278_v56  ;;  %v428_v58 = vpop.f32.mrb[13].mxu0  ;;  %v680_v60 = vsel %vm655_vm2, %v631_v53, 0.0  ;;  %v2345_v0 = vsel %vm538_vm11, %v424_v44, %v570_v52 }
 0x141   : > { %v429_v62 = vadd.f32 %v2278_v56, %v428_v58  ;;  %678 = vadd.xlane.f32.xlu1 %v677_v59  ;;  %681 = vadd.xlane.f32.xlu0 %v680_v60  ;;  %v2343_v63 = vsel %vm537_vm12, %v419_v49, %v569_v54  ;;  %v634_v11 = vmul.f32 %v2345_v0, %v2345_v0  ;;  %v1073_v58 = vld [vmem:[%s3017_s3 + $0x8] sm:$0xff] }
 0x142   : > { %vm540_vm13 = vcmp.gt.f32.partialorder %v434_v57, 0.0  ;;  %v572_v1 = vmul.f32 0.01, %v434_v57  ;;  %v633_v2 = vmul.f32 %v2343_v63, %v2343_v63 }
 0x143   : > { %vm539_vm14 = vcmp.gt.f32.partialorder %v429_v62, 0.0  ;;  %v571_v5 = vmul.f32 0.01, %v429_v62  ;;  %v1699_v6 = vpop.f32.mrb[14].mxu0  ;;  %v689_v23 = vsel %vm655_vm2, %v634_v11, 0.0 }
 0x144   : > { %v444_v7 = vadd.f32 %v1699_v6, %v2278_v56  ;;  %v438_v8 = vpop.f32.mrb[15].mxu0  ;;  %v686_v10 = vsel %vm655_vm2, %v633_v2, 0.0  ;;  %v2357_v16 = vsel %vm540_vm13, %v434_v57, %v572_v1  ;;  %v1072_v57 = vld [vmem:[%s3017_s3] sm:$0xff] }
 0x145   : > { %v439_v12 = vadd.f32 %v2278_v56, %v438_v8  ;;  %684 = vadd.xlane.f32.xlu1 %v683_v9  ;;  %687 = vadd.xlane.f32.xlu0 %v686_v10  ;;  %v2355_v13 = vsel %vm539_vm14, %v429_v62, %v571_v5  ;;  %v636_v25 = vmul.f32 %v2357_v16, %v2357_v16 }
 0x146   : > { %vm542_vm15 = vcmp.gt.f32.partialorder %v444_v7, 0.0  ;;  %v574_v17 = vmul.f32 0.01, %v444_v7  ;;  %v635_v18 = vmul.f32 %v2355_v13, %v2355_v13  ;;  %v1820_v2 = vpack.c.bf16 %v1073_v58, %v1072_v57 }
 0x147   : > { %vm541_vm0 = vcmp.gt.f32.partialorder %v439_v12, 0.0  ;;  %v573_v19 = vmul.f32 0.01, %v439_v12  ;;  %v1702_v20 = vpop.f32.mrb[16].mxu0  ;;  %v695_v37 = vsel %vm655_vm2, %v636_v25, 0.0 }
 0x148   : > { %v454_v21 = vadd.f32 %v1702_v20, %v2278_v56  ;;  %v448_v22 = vpop.f32.mrb[17].mxu0  ;;  %v692_v24 = vsel %vm655_vm2, %v635_v18, 0.0  ;;  %v2369_v30 = vsel %vm542_vm15, %v444_v7, %v574_v17  ;;  %1821 = vmatprep.subr.bf16.mxu1 %v1820_v2 }
 0x149   : > { %v449_v28 = vadd.f32 %v2278_v56, %v448_v22  ;;  %690 = vadd.xlane.f32.xlu1 %v689_v23  ;;  %693 = vadd.xlane.f32.xlu0 %v692_v24  ;;  %v2367_v29 = vsel %vm541_vm0, %v439_v12, %v573_v19  ;;  %v638_v41 = vmul.f32 %v2369_v30, %v2369_v30  ;;  %v1075_v22 = vld [vmem:[%s3017_s3 + $0x18] sm:$0xff] }
 0x14a   : > { %vm544_vm1 = vcmp.gt.f32.partialorder %v454_v21, 0.0  ;;  %v576_v31 = vmul.f32 0.01, %v454_v21  ;;  %v637_v32 = vmul.f32 %v2367_v29, %v2367_v29  ;;  %1823 = vmatpush3.bf16.msra.mxu1 %v1820_v2 }
 0x14b   : > { %vm543_vm3 = vcmp.gt.f32.partialorder %v449_v28, 0.0  ;;  %v575_v33 = vmul.f32 0.01, %v449_v28  ;;  %v1705_v34 = vpop.f32.mrb[18].mxu0  ;;  %v701_v53 = vsel %vm655_vm2, %v638_v41, 0.0 }
 0x14c   : > { %v464_v35 = vadd.f32 %v1705_v34, %v2278_v56  ;;  %v458_v36 = vpop.f32.mrb[19].mxu0  ;;  %v698_v40 = vsel %vm655_vm2, %v637_v32, 0.0  ;;  %v2381_v44 = vsel %vm544_vm1, %v454_v21, %v576_v31  ;;  %v1074_v21 = vld [vmem:[%s3017_s3 + $0x10] sm:$0xff] }
 0x14d   : > { %v459_v42 = vadd.f32 %v2278_v56, %v458_v36  ;;  %696 = vadd.xlane.f32.xlu1 %v695_v37  ;;  %699 = vadd.xlane.f32.xlu0 %v698_v40  ;;  %v2379_v43 = vsel %vm543_vm3, %v449_v28, %v575_v33  ;;  %v640_v55 = vmul.f32 %v2381_v44, %v2381_v44 }
 0x14e   : > { %vm546_vm4 = vcmp.gt.f32.partialorder %v464_v35, 0.0  ;;  %v578_v45 = vmul.f32 0.01, %v464_v35  ;;  %v639_v46 = vmul.f32 %v2379_v43, %v2379_v43  ;;  %v1824_v25 = vpack.c.bf16 %v1075_v22, %v1074_v21 }
 0x14f   : > { %vm545_vm5 = vcmp.gt.f32.partialorder %v459_v42, 0.0  ;;  %v577_v47 = vmul.f32 0.01, %v459_v42  ;;  %v1708_v48 = vpop.f32.mrb[20].mxu0  ;;  %v707_v9 = vsel %vm655_vm2, %v640_v55, 0.0 }
 0x150   : > { %v474_v49 = vadd.f32 %v1708_v48, %v2278_v56  ;;  %v468_v52 = vpop.f32.mrb[21].mxu0  ;;  %v704_v54 = vsel %vm655_vm2, %v639_v46, 0.0  ;;  %v2400_v61 = vsel %vm546_vm4, %v464_v35, %v578_v45  ;;  %1825 = vmatprep.subr.bf16.mxu1 %v1824_v25  ;;  %v1076_v46 = vld [vmem:[%s3017_s3 + $0x20] sm:$0xff] }
 0x151   : > { %v469_v59 = vadd.f32 %v2278_v56, %v468_v52  ;;  %702 = vadd.xlane.f32.xlu1 %v701_v53  ;;  %705 = vadd.xlane.f32.xlu0 %v704_v54  ;;  %v2397_v60 = vsel %vm545_vm5, %v459_v42, %v577_v47  ;;  %v642_v11 = vmul.f32 %v2400_v61, %v2400_v61  ;;  %v1077_v54 = vld [vmem:[%s3017_s3 + $0x28] sm:$0xff] }
 0x152   : > { %vm548_vm6 = vcmp.gt.f32.partialorder %v474_v49, 0.0  ;;  %v580_v62 = vmul.f32 0.01, %v474_v49  ;;  %v641_v1 = vmul.f32 %v2397_v60, %v2397_v60  ;;  %1827 = vmatpush3.bf16.msra.mxu1 %v1824_v25 }
 0x153   : > { %vm547_vm7 = vcmp.gt.f32.partialorder %v469_v59, 0.0  ;;  %v579_v5 = vmul.f32 0.01, %v469_v59  ;;  %v1711_v6 = vpop.f32.mrb[22].mxu0  ;;  %v713_v32 = vsel %vm655_vm2, %v642_v11, 0.0  ;;  %v1078_v11 = vld [vmem:[%s3017_s3 + $0x30] sm:$0xff] }
 0x154   : > { %v484_v7 = vadd.f32 %v1711_v6, %v2278_v56  ;;  %v478_v8 = vpop.f32.mrb[23].mxu0  ;;  %v710_v10 = vsel %vm655_vm2, %v641_v1, 0.0  ;;  %v2413_v18 = vsel %vm548_vm6, %v474_v49, %v580_v62  ;;  %v1828_v1 = vpack.c.bf16 %v1077_v54, %v1076_v46 }
 0x155   : > { %v479_v12 = vadd.f32 %v2278_v56, %v478_v8  ;;  %708 = vadd.xlane.f32.xlu1 %v707_v9  ;;  %711 = vadd.xlane.f32.xlu0 %v710_v10  ;;  %v2410_v17 = vsel %vm547_vm7, %v469_v59, %v579_v5  ;;  %v644_v34 = vmul.f32 %v2413_v18, %v2413_v18 }
 0x156   : > { %vm550_vm8 = vcmp.gt.f32.partialorder %v484_v7, 0.0  ;;  %v582_v19 = vmul.f32 0.01, %v484_v7  ;;  %v643_v20 = vmul.f32 %v2410_v17, %v2410_v17  ;;  %1829 = vmatprep.subr.bf16.mxu1 %v1828_v1 }
 0x157   : > { %vm549_vm9 = vcmp.gt.f32.partialorder %v479_v12, 0.0  ;;  %v581_v23 = vmul.f32 0.01, %v479_v12  ;;  %v1714_v24 = vpop.f32.mrb[24].mxu0  ;;  %v719_v49 = vsel %vm655_vm2, %v644_v34, 0.0  ;;  %1831 = vmatpush3.bf16.msra.mxu1 %v1828_v1 }
 0x158   : > { %v494_v28 = vadd.f32 %v1714_v24, %v2278_v56  ;;  %v488_v31 = vpop.f32.mrb[25].mxu0  ;;  %v716_v33 = vsel %vm655_vm2, %v643_v20, 0.0  ;;  %v2432_v37 = vsel %vm550_vm8, %v484_v7, %v582_v19 }
 0x159   : > { %v489_v35 = vadd.f32 %v2278_v56, %v488_v31  ;;  %714 = vadd.xlane.f32.xlu1 %v713_v32  ;;  %717 = vadd.xlane.f32.xlu0 %v716_v33  ;;  %v2429_v36 = vsel %vm549_vm9, %v479_v12, %v581_v23  ;;  %v646_v53 = vmul.f32 %v2432_v37, %v2432_v37  ;;  %v1079_v12 = vld [vmem:[%s3017_s3 + $0x38] sm:$0xff] }
 0x15a   : > { %vm552_vm10 = vcmp.gt.f32.partialorder %v494_v28, 0.0  ;;  %v584_v40 = vmul.f32 0.01, %v494_v28  ;;  %v645_v41 = vmul.f32 %v2429_v36, %v2429_v36  ;;  %v1832_v24 = vpack.c.bf16 %v1079_v12, %v1078_v11 }
 0x15b   : > { %vm551_vm11 = vcmp.gt.f32.partialorder %v489_v35, 0.0  ;;  %v583_v42 = vmul.f32 0.01, %v489_v35  ;;  %v1717_v45 = vpop.f32.mrb[26].mxu0  ;;  %v725_v8 = vsel %vm655_vm2, %v646_v53, 0.0 }
 0x15c   : > { %v504_v47 = vadd.f32 %v1717_v45, %v2278_v56  ;;  %v498_v48 = vpop.f32.mrb[27].mxu0  ;;  %v722_v52 = vsel %vm655_vm2, %v645_v41, 0.0  ;;  %v2451_v58 = vsel %vm552_vm10, %v494_v28, %v584_v40  ;;  %1833 = vmatprep.subr.bf16.mxu1 %v1832_v24 }
 0x15d   : > { %v499_v55 = vadd.f32 %v2278_v56, %v498_v48  ;;  %720 = vadd.xlane.f32.xlu1 %v719_v49  ;;  %723 = vadd.xlane.f32.xlu0 %v722_v52  ;;  %v2448_v57 = vsel %vm551_vm11, %v489_v35, %v583_v42  ;;  %v648_v10 = vmul.f32 %v2451_v58, %v2451_v58 }
 0x15e   : > { %vm554_vm12 = vcmp.gt.f32.partialorder %v504_v47, 0.0  ;;  %v586_v59 = vmul.f32 0.01, %v504_v47  ;;  %v647_v62 = vmul.f32 %v2448_v57, %v2448_v57  ;;  %1835 = vmatpush3.bf16.msra.mxu1 %v1832_v24 }
 0x15f   : > { %vm553_vm13 = vcmp.gt.f32.partialorder %v499_v55, 0.0  ;;  %v585_v2 = vmul.f32 0.01, %v499_v55  ;;  %v1720_v5 = vpop.f32.mrb[28].mxu0  ;;  %v731_v33 = vsel %vm655_vm2, %v648_v10, 0.0 }
 0x160   : > { %v514_v6 = vadd.f32 %v1720_v5, %v2278_v56  ;;  %v508_v7 = vpop.f32.mrb[29].mxu0  ;;  %v728_v9 = vsel %vm655_vm2, %v647_v62, 0.0  ;;  %v2470_v21 = vsel %vm554_vm12, %v504_v47, %v586_v59 }
 0x161   : > { %v509_v19 = vadd.f32 %v2278_v56, %v508_v7  ;;  %726 = vadd.xlane.f32.xlu1 %v725_v8  ;;  %729 = vadd.xlane.f32.xlu0 %v728_v9  ;;  %v2467_v20 = vsel %vm553_vm13, %v499_v55, %v585_v2  ;;  %v650_v35 = vmul.f32 %v2470_v21, %v2470_v21 }
 0x162   : > { %vm556_vm14 = vcmp.gt.f32.partialorder %v514_v6, 0.0  ;;  %v588_v22 = vmul.f32 0.01, %v514_v6  ;;  %v649_v23 = vmul.f32 %v2467_v20, %v2467_v20 }
 0x163   : > { %vm555_vm15 = vcmp.gt.f32.partialorder %v509_v19, 0.0  ;;  %v587_v25 = vmul.f32 0.01, %v509_v19  ;;  %v1723_v28 = vpop.f32.mrb[30].mxu0  ;;  %v737_v48 = vsel %vm655_vm2, %v650_v35, 0.0 }
 0x164   : > { %v524_v31 = vadd.f32 %v1723_v28, %v2278_v56  ;;  %v518_v32 = vpop.f32.mrb[31].mxu0  ;;  %v734_v34 = vsel %vm655_vm2, %v649_v23, 0.0  ;;  %v2483_v42 = vsel %vm556_vm14, %v514_v6, %v588_v22 }
 0x165   : > { %v519_v40 = vadd.f32 %v2278_v56, %v518_v32  ;;  %732 = vadd.xlane.f32.xlu1 %v731_v33  ;;  %735 = vadd.xlane.f32.xlu0 %v734_v34  ;;  %v2480_v41 = vsel %vm555_vm15, %v509_v19, %v587_v25  ;;  %v652_v56 = vmul.f32 %v2483_v42, %v2483_v42 }
 0x166   : > { %vm558_vm0 = vcmp.gt.f32.partialorder %v524_v31, 0.0  ;;  %v590_v45 = vmul.f32 0.01, %v524_v31  ;;  %v651_v46 = vmul.f32 %v2480_v41, %v2480_v41 }
 0x167   : > { %vm557_vm1 = vcmp.gt.f32.partialorder %v519_v40, 0.0  ;;  %v589_v47 = vmul.f32 0.01, %v519_v40  ;;  %v743_v55 = vsel %vm655_vm2, %v652_v56, 0.0 }
 0x168   : > { %v740_v49 = vsel %vm655_vm2, %v651_v46, 0.0  ;;  %v2493_v53 = vsel %vm558_vm0, %v524_v31, %v590_v45 }
 0x169   : > { %738 = vadd.xlane.f32.xlu1 %v737_v48  ;;  %741 = vadd.xlane.f32.xlu0 %v740_v49  ;;  %v2491_v52 = vsel %vm557_vm1, %v519_v40, %v589_v47  ;;  %v654_v62 = vmul.f32 %v2493_v53, %v2493_v53 }
 0x16a   : > { %v653_v54 = vmul.f32 %v2491_v52, %v2491_v52 }
 0x16b   : > { %v749_v1 = vsel %vm655_vm2, %v654_v62, 0.0 }
 0x16c   : > { %v746_v59 = vsel %vm655_vm2, %v653_v54, 0.0 }
 0x16d   : > { %744 = vadd.xlane.f32.xlu1 %v743_v55  ;;  %747 = vadd.xlane.f32.xlu0 %v746_v59 }
 0x171   : > { %750 = vadd.xlane.f32.xlu1 %v749_v1 }
 0x1be   : > { %v658_v2 = vpop.xlane.xlu0 %657 }
 0x1bf   : > { %1877 = vrsqrt.f32 %v658_v2  ;;  %vm754_vm3 = vcmp.eq.f32.partialorder %v658_v2, inf  ;;  %vm756_vm4 = vcmp.eq.f32.partialorder %v658_v2, 0.0  ;;  %v757_v22 = vand.u32 2147483648, %v658_v2 }
 0x1c2   : > { %v664_v5 = vpop.xlane.xlu1 %663  ;;  %v661_v6 = vpop.xlane.xlu0 %660 }
 0x1c3   : > { %1879 = vrsqrt.f32 %v664_v5  ;;  %vm768_vm5 = vcmp.eq.f32.partialorder %v664_v5, inf  ;;  %vm770_vm6 = vcmp.eq.f32.partialorder %v664_v5, 0.0  ;;  %v771_v24 = vand.u32 2147483648, %v664_v5 }
 0x1c4   : > { %1881 = vrsqrt.f32 %v661_v6  ;;  %vm761_vm7 = vcmp.eq.f32.partialorder %v661_v6, inf  ;;  %vm763_vm8 = vcmp.eq.f32.partialorder %v661_v6, 0.0  ;;  %v764_v31 = vand.u32 2147483648, %v661_v6 }
 0x1c6   : > { %v667_v7 = vpop.xlane.xlu1 %666  ;;  %v2502_v8 = vpop.xlane.xlu0 %669 }
 0x1c7   : > { %1883 = vrsqrt.f32 %v667_v7  ;;  %vm775_vm9 = vcmp.eq.f32.partialorder %v667_v7, inf  ;;  %vm777_vm10 = vcmp.eq.f32.partialorder %v667_v7, 0.0  ;;  %v778_v40 = vand.u32 2147483648, %v667_v7 }
 0x1c8   : > { %1885 = vrsqrt.f32 %v2502_v8  ;;  %vm782_vm11 = vcmp.eq.f32.partialorder %v2502_v8, inf  ;;  %vm784_vm12 = vcmp.eq.f32.partialorder %v2502_v8, 0.0  ;;  %v785_v49 = vand.u32 2147483648, %v2502_v8 }
 0x1c9   : > { %v1878_v9 = vpop.eup %1877 }
 0x1ca   : > { %v753_v10 = vmul.f32 %v1878_v9, %v658_v2  ;;  %v2505_v11 = vpop.xlane.xlu1 %672  ;;  %v2507_v12 = vpop.xlane.xlu0 %675 }
 0x1cb   : > { %1887 = vrsqrt.f32 %v2505_v11  ;;  %vm789_vm13 = vcmp.eq.f32.partialorder %v2505_v11, inf  ;;  %vm791_vm14 = vcmp.eq.f32.partialorder %v2505_v11, 0.0  ;;  %v792_v9 = vand.u32 2147483648, %v2505_v11 }
 0x1cc   : > { %v755_v19 = vsel %vm754_vm3, %v658_v2, %v753_v10  ;;  %1889 = vrsqrt.f32 %v2507_v12  ;;  %vm796_vm15 = vcmp.eq.f32.partialorder %v2507_v12, inf  ;;  %vm798_vm0 = vcmp.eq.f32.partialorder %v2507_v12, 0.0 }
 0x1cd   : > { %v1880_v23 = vpop.eup %1879  ;;  %v758_v34 = vsel %vm756_vm4, %v757_v22, %v755_v19 }
 0x1ce   : > { %v1882_v25 = vpop.eup %1881  ;;  %v767_v28 = vmul.f32 %v1880_v23, %v664_v5  ;;  %v2511_v32 = vpop.xlane.xlu1 %678  ;;  %v976_v56 = vmax.f32 %v758_v34, 1e-12 }
 0x1cf   : > { %v2513_v33 = vpop.xlane.xlu0 %681  ;;  %v760_v35 = vmul.f32 %v1882_v25, %v661_v6  ;;  %1891 = vrsqrt.f32 %v2511_v32  ;;  %vm803_vm1 = vcmp.eq.f32.partialorder %v2511_v32, inf  ;;  %vm805_vm3 = vcmp.eq.f32.partialorder %v2511_v32, 0.0 }
 0x1d0   : > { %v769_v45 = vsel %vm768_vm5, %v664_v5, %v767_v28  ;;  %1893 = vrsqrt.f32 %v2513_v33  ;;  %vm810_vm4 = vcmp.eq.f32.partialorder %v2513_v33, inf  ;;  %vm812_vm5 = vcmp.eq.f32.partialorder %v2513_v33, 0.0 }
 0x1d1   : > { %v1884_v46 = vpop.eup %1883  ;;  %v772_v47 = vsel %vm770_vm6, %v771_v24, %v769_v45  ;;  %v762_v48 = vsel %vm761_vm7, %v661_v6, %v760_v35  ;;  %v799_v24 = vand.u32 2147483648, %v2507_v12 }
 0x1d2   : > { %v1886_v54 = vpop.eup %1885  ;;  %v765_v55 = vsel %vm763_vm8, %v764_v31, %v762_v48  ;;  %v774_v59 = vmul.f32 %v1884_v46, %v667_v7  ;;  %v2527_v62 = vpop.xlane.xlu1 %684  ;;  %v978_v2 = vmax.f32 %v772_v47, 1e-12  ;;  %v806_v46 = vand.u32 2147483648, %v2511_v32 }
 0x1d3   : > { %v2529_v1 = vpop.xlane.xlu0 %687  ;;  %v781_v5 = vmul.f32 %v1886_v54, %v2502_v8  ;;  %1895 = vrsqrt.f32 %v2527_v62  ;;  %v977_v10 = vmax.f32 %v765_v55, 1e-12  ;;  %vm817_vm6 = vcmp.eq.f32.partialorder %v2527_v62, inf }
 0x1d4   : > { %v776_v6 = vsel %vm775_vm9, %v667_v7, %v774_v59  ;;  %1897 = vrcp.f32 %v976_v56  ;;  %vm819_vm7 = vcmp.eq.f32.partialorder %v2527_v62, 0.0  ;;  %vm824_vm8 = vcmp.eq.f32.partialorder %v2529_v1, inf }
 0x1d5   : > { %v1888_v19 = vpop.eup %1887  ;;  %v779_v22 = vsel %vm777_vm10, %v778_v40, %v776_v6  ;;  %v783_v23 = vsel %vm782_vm11, %v2502_v8, %v781_v5  ;;  %1899 = vrsqrt.f32 %v2529_v1  ;;  %vm826_vm9 = vcmp.eq.f32.partialorder %v2529_v1, 0.0 }
 0x1d6   : > { %v1890_v25 = vpop.eup %1889  ;;  %v979_v28 = vmax.f32 %v779_v22, 1e-12  ;;  %v786_v31 = vsel %vm784_vm12, %v785_v49, %v783_v23  ;;  %v788_v34 = vmul.f32 %v1888_v19, %v2505_v11  ;;  %v2546_v35 = vpop.xlane.xlu1 %690  ;;  %1901 = vrcp.f32 %v978_v2 }
 0x1d7   : > { %v2548_v7 = vpop.xlane.xlu0 %693  ;;  %v795_v40 = vmul.f32 %v1890_v25, %v2507_v12  ;;  %1903 = vrcp.f32 %v977_v10  ;;  %v980_v45 = vmax.f32 %v786_v31, 1e-12  ;;  %vm831_vm10 = vcmp.eq.f32.partialorder %v2546_v35, inf }
 0x1d8   : > { %v790_v8 = vsel %vm789_vm13, %v2505_v11, %v788_v34  ;;  %1905 = vrcp.f32 %v979_v28  ;;  %vm833_vm11 = vcmp.eq.f32.partialorder %v2546_v35, 0.0  ;;  %vm838_vm12 = vcmp.eq.f32.partialorder %v2548_v7, inf }
 0x1d9   : > { %v1892_v47 = vpop.eup %1891  ;;  %v793_v48 = vsel %vm791_vm14, %v792_v9, %v790_v8  ;;  %v797_v49 = vsel %vm796_vm15, %v2507_v12, %v795_v40  ;;  %1907 = vrsqrt.f32 %v2546_v35  ;;  %v813_v9 = vand.u32 2147483648, %v2513_v33 }
 0x1da   : > { %v1894_v56 = vpop.eup %1893  ;;  %v981_v54 = vmax.f32 %v793_v48, 1e-12  ;;  %v800_v55 = vsel %vm798_vm0, %v799_v24, %v797_v49  ;;  %v802_v59 = vmul.f32 %v1892_v47, %v2511_v32  ;;  %v2567_v2 = vpop.xlane.xlu1 %696  ;;  %1909 = vrsqrt.f32 %v2548_v7 }
 0x1db   : > { %v2569_v5 = vpop.xlane.xlu0 %699  ;;  %v809_v11 = vmul.f32 %v1894_v56, %v2513_v33  ;;  %1911 = vrcp.f32 %v980_v45  ;;  %v982_v10 = vmax.f32 %v800_v55, 1e-12  ;;  %v827_v8 = vand.u32 2147483648, %v2529_v1 }
 0x1dc   : > { %v804_v12 = vsel %vm803_vm1, %v2511_v32, %v802_v59  ;;  %1913 = vrcp.f32 %v981_v54  ;;  %v820_v32 = vand.u32 2147483648, %v2527_v62  ;;  %v834_v56 = vand.u32 2147483648, %v2546_v35 }
 0x1dd   : > { %v1896_v6 = vpop.eup %1895  ;;  %v807_v19 = vsel %vm805_vm3, %v806_v46, %v804_v12  ;;  %v811_v22 = vsel %vm810_vm4, %v2513_v33, %v809_v11  ;;  %1915 = vrsqrt.f32 %v2567_v2  ;;  %vm840_vm13 = vcmp.eq.f32.partialorder %v2548_v7, 0.0 }
 0x1de   : > { %v983_v23 = vmax.f32 %v807_v19, 1e-12  ;;  %v814_v24 = vsel %vm812_vm5, %v813_v9, %v811_v22  ;;  %v816_v25 = vmul.f32 %v1896_v6, %v2527_v62  ;;  %v2587_v28 = vpop.xlane.xlu1 %702  ;;  %v1898_v34 = vpop.eup %1897  ;;  %1917 = vrsqrt.f32 %v2569_v5 }
 0x1df   : > { %v2589_v31 = vpop.xlane.xlu0 %705  ;;  %v1900_v33 = vpop.eup %1899  ;;  %1919 = vrcp.f32 %v982_v10  ;;  %v984_v40 = vmax.f32 %v814_v24, 1e-12  ;;  %v1009_v54 = vmul.f32 %v1898_v34, %v2284_v3  ;;  %v841_v9 = vand.u32 2147483648, %v2548_v7 }
 0x1e0   : > { %v818_v45 = vsel %vm817_vm6, %v2527_v62, %v816_v25  ;;  %v1902_v46 = vpop.eup %1901  ;;  %1921 = vrcp.f32 %v983_v23  ;;  %v823_v47 = vmul.f32 %v1900_v33, %v2529_v1  ;;  %vm845_vm14 = vcmp.eq.f32.partialorder %v2567_v2, inf }
 0x1e1   : > { %v1904_v48 = vpop.eup %1903  ;;  %v821_v49 = vsel %vm819_vm7, %v820_v32, %v818_v45  ;;  %1923 = vrsqrt.f32 %v2587_v28  ;;  %vm847_vm15 = vcmp.eq.f32.partialorder %v2567_v2, 0.0  ;;  %v848_v3 = vand.u32 2147483648, %v2567_v2  ;;  %1740 = vmatprep.mubr.msk.f32.mxu1 %vm655_vm2, %v1009_v54 }
 0x1e2   : > { %v2607_v55 = vpop.xlane.xlu1 %708  ;;  %v1906_v11 = vpop.eup %1905  ;;  %1925 = vrsqrt.f32 %v2589_v31  ;;  %v985_v12 = vmax.f32 %v821_v49, 1e-12  ;;  %v825_v6 = vsel %vm824_vm8, %v2529_v1, %v823_v47  ;;  %v1011_v22 = vmul.f32 %v1904_v48, %v2286_v4 }
 0x1e3   : > { %v2609_v59 = vpop.xlane.xlu0 %711  ;;  %v1908_v62 = vpop.eup %1907  ;;  %1927 = vrcp.f32 %v984_v40  ;;  %vm852_vm0 = vcmp.eq.f32.partialorder %v2569_v5, inf  ;;  %vm854_vm1 = vcmp.eq.f32.partialorder %v2569_v5, 0.0  ;;  %v855_v4 = vand.u32 2147483648, %v2569_v5 }
 0x1e4   : > { %v1910_v10 = vpop.eup %1909  ;;  %v830_v19 = vmul.f32 %v1908_v62, %v2546_v35  ;;  %1929 = vrsqrt.f32 %v2607_v55  ;;  %vm859_vm3 = vcmp.eq.f32.partialorder %v2587_v28, inf  ;;  %1741 = vmatmul.mubr.msk.f32.vlgmr.msra.gmra.mrb[0].mxu1 %vm655_vm2, %v1011_v22  ;;  %v1013_v40 = vmul.f32 %v1902_v46, %v2295_v14 }
 0x1e5   : > { %v1912_v23 = vpop.eup %1911  ;;  %v837_v24 = vmul.f32 %v1910_v10, %v2548_v7  ;;  %v828_v47 = vsel %vm826_vm9, %v827_v8, %v825_v6  ;;  %vm861_vm4 = vcmp.eq.f32.partialorder %v2587_v28, 0.0  ;;  %1931 = vrsqrt.f32 %v2609_v59 }
 0x1e6   : > { %v2628_v25 = vpop.xlane.xlu1 %714  ;;  %v1914_v32 = vpop.eup %1913  ;;  %v832_v33 = vsel %vm831_vm10, %v2546_v35, %v830_v19  ;;  %1933 = vrcp.f32 %v985_v12  ;;  %v862_v14 = vand.u32 2147483648, %v2587_v28  ;;  %1743 = vmatprep.mubr.msk.f32.mxu1 %vm655_vm2, %v1013_v40  ;;  %vm866_vm5 = vcmp.eq.f32.partialorder %v2589_v31, inf }
 0x1e7   : > { %v2630_v34 = vpop.xlane.xlu0 %717  ;;  %v1916_v45 = vpop.eup %1915  ;;  %v839_v48 = vsel %vm838_vm12, %v2548_v7, %v837_v24  ;;  %v835_v54 = vsel %vm833_vm11, %v834_v56, %v832_v33  ;;  %v1015_v10 = vmul.f32 %v1906_v11, %v2297_v15  ;;  %v986_v56 = vmax.f32 %v828_v47, 1e-12 }
 0x1e8   : > { %v1918_v49 = vpop.eup %1917  ;;  %v844_v62 = vmul.f32 %v1916_v45, %v2567_v2  ;;  %v842_v8 = vsel %vm840_vm13, %v841_v9, %v839_v48  ;;  %vm868_vm6 = vcmp.eq.f32.partialorder %v2589_v31, 0.0  ;;  %v869_v19 = vand.u32 2147483648, %v2589_v31 }
 0x1e9   : > { %v1920_v1 = vpop.eup %1919  ;;  %v851_v46 = vmul.f32 %v1918_v49, %v2569_v5  ;;  %v987_v9 = vmax.f32 %v835_v54, 1e-12  ;;  %vm873_vm7 = vcmp.eq.f32.partialorder %v2607_v55, inf  ;;  %1744 = vmatmul.mubr.msk.f32.gmra.mrb[2].mxu1 %vm655_vm2, %v1015_v10  ;;  %v988_v33 = vmax.f32 %v842_v8, 1e-12 }
 0x1ea   : > { %v2656_v12 = vpop.xlane.xlu1 %720  ;;  %v1922_v35 = vpop.eup %1921  ;;  %v846_v6 = vsel %vm845_vm14, %v2567_v2, %v844_v62  ;;  %1935 = vrsqrt.f32 %v2628_v25  ;;  %vm875_vm8 = vcmp.eq.f32.partialorder %v2607_v55, 0.0  ;;  %v1017_v47 = vmul.f32 %v1912_v23, %v2307_v26 }
 0x1eb   : > { %v1924_v7 = vpop.eup %1923  ;;  %v849_v22 = vsel %vm847_vm15, %v848_v3, %v846_v6  ;;  %v853_v15 = vsel %vm852_vm0, %v2569_v5, %v851_v46  ;;  %v2670_v11 = vpop.xlane.xlu0 %723  ;;  %1937 = vrsqrt.f32 %v2630_v34  ;;  %vm880_vm9 = vcmp.eq.f32.partialorder %v2609_v59, inf }
 0x1ec   : > { %v1926_v24 = vpop.eup %1925  ;;  %v856_v40 = vsel %vm854_vm1, %v855_v4, %v853_v15  ;;  %v858_v45 = vmul.f32 %v1924_v7, %v2587_v28  ;;  %1939 = vrcp.f32 %v986_v56  ;;  %v989_v48 = vmax.f32 %v849_v22, 1e-12  ;;  %1746 = vmatprep.mubr.msk.f32.mxu1 %vm655_vm2, %v1017_v47 }
 0x1ed   : > { %v1928_v2 = vpop.eup %1927  ;;  %v865_v3 = vmul.f32 %v1926_v24, %v2589_v31  ;;  %v876_v4 = vand.u32 2147483648, %v2607_v55  ;;  %1941 = vrcp.f32 %v987_v9  ;;  %v990_v62 = vmax.f32 %v856_v40, 1e-12 }
 0x1ee   : > { %v860_v5 = vsel %vm859_vm3, %v2587_v28, %v858_v45  ;;  %v2684_v49 = vpop.xlane.xlu1 %726  ;;  %v1930_v54 = vpop.eup %1929  ;;  %1943 = vrcp.f32 %v988_v33  ;;  %v1019_v46 = vmul.f32 %v1914_v32, %v2309_v27  ;;  %vm882_vm10 = vcmp.eq.f32.partialorder %v2609_v59, 0.0 }
 0x1ef   : > { %v863_v8 = vsel %vm861_vm4, %v862_v14, %v860_v5  ;;  %v867_v26 = vsel %vm866_vm5, %v2589_v31, %v865_v3  ;;  %v872_v23 = vmul.f32 %v1930_v54, %v2607_v55  ;;  %v1932_v10 = vpop.eup %1931  ;;  %v883_v28 = vand.u32 2147483648, %v2609_v59  ;;  %v2700_v14 = vpop.xlane.xlu0 %729 }
 0x1f0   : > { %v870_v56 = vsel %vm868_vm6, %v869_v19, %v867_v26  ;;  %1945 = vrsqrt.f32 %v2656_v12  ;;  %v1934_v6 = vpop.eup %1933  ;;  %v991_v7 = vmax.f32 %v863_v8, 1e-12  ;;  %v879_v27 = vmul.f32 %v1932_v10, %v2609_v59  ;;  %1747 = vmatmul.mubr.msk.f32.gmra.mrb[4].mxu1 %vm655_vm2, %v1019_v46 }
 0x1f1   : > { %1947 = vrcp.f32 %v989_v48  ;;  %v874_v9 = vsel %vm873_vm7, %v2607_v55, %v872_v23  ;;  %vm887_vm11 = vcmp.eq.f32.partialorder %v2628_v25, inf  ;;  %v1021_v32 = vmul.f32 %v1920_v1, %v2319_v38 }
 0x1f2   : > { %1949 = vrcp.f32 %v990_v62  ;;  %v877_v31 = vsel %vm875_vm8, %v876_v4, %v874_v9  ;;  %v992_v19 = vmax.f32 %v870_v56, 1e-12  ;;  %v881_v22 = vsel %vm880_vm9, %v2609_v59, %v879_v27  ;;  %v2716_v15 = vpop.xlane.xlu1 %732 }
 0x1f3   : > { %vm889_vm12 = vcmp.eq.f32.partialorder %v2628_v25, 0.0  ;;  %1951 = vrsqrt.f32 %v2670_v11  ;;  %v890_v24 = vand.u32 2147483648, %v2628_v25  ;;  %vm894_vm13 = vcmp.eq.f32.partialorder %v2630_v34, inf  ;;  %1749 = vmatprep.mubr.msk.f32.mxu1 %vm655_vm2, %v1021_v32 }
 0x1f4   : > { %v1023_v55 = vmul.f32 %v1922_v35, %v2321_v39  ;;  %1953 = vrsqrt.f32 %v2684_v49  ;;  %v1936_v38 = vpop.eup %1935  ;;  %v993_v1 = vmax.f32 %v877_v31, 1e-12  ;;  %vm896_vm14 = vcmp.eq.f32.partialorder %v2630_v34, 0.0  ;;  %v2731_v39 = vpop.xlane.xlu0 %735 }
 0x1f5   : > { %1955 = vrcp.f32 %v991_v7  ;;  %v897_v33 = vand.u32 2147483648, %v2630_v34  ;;  %v1938_v40 = vpop.eup %1937  ;;  %v884_v45 = vsel %vm882_vm10, %v883_v28, %v881_v22  ;;  %v886_v3 = vmul.f32 %v1936_v38, %v2628_v25 }
 0x1f6   : > { %1750 = vmatmul.mubr.msk.f32.gmra.mrb[6].mxu1 %vm655_vm2, %v1023_v55  ;;  %v1025_v47 = vmul.f32 %v1928_v2, %v2331_v50  ;;  %1957 = vrsqrt.f32 %v2700_v14  ;;  %v1940_v35 = vpop.eup %1939  ;;  %v893_v48 = vmul.f32 %v1938_v40, %v2630_v34  ;;  %vm901_vm15 = vcmp.eq.f32.partialorder %v2656_v12, inf  ;;  %v2749_v26 = vpop.xlane.xlu1 %738 }
 0x1f7   : > { %1959 = vrcp.f32 %v992_v19  ;;  %vm903_vm0 = vcmp.eq.f32.partialorder %v2656_v12, 0.0  ;;  %v1942_v59 = vpop.eup %1941  ;;  %v888_v5 = vsel %vm887_vm11, %v2628_v25, %v886_v3  ;;  %v904_v4 = vand.u32 2147483648, %v2656_v12 }
 0x1f8   : > { %1752 = vmatprep.mubr.msk.f32.mxu1 %vm655_vm2, %v1025_v47  ;;  %v1027_v50 = vmul.f32 %v1934_v6, %v2333_v51  ;;  %1961 = vrsqrt.f32 %v2716_v15  ;;  %v1944_v2 = vpop.eup %1943  ;;  %v994_v54 = vmax.f32 %v884_v45, 1e-12  ;;  %v891_v62 = vsel %vm889_vm12, %v890_v24, %v888_v5 }
 0x1f9   : > { %v895_v8 = vsel %vm894_vm13, %v2630_v34, %v893_v48  ;;  %vm908_vm1 = vcmp.eq.f32.partialorder %v2670_v11, inf  ;;  %1963 = vrcp.f32 %v993_v1  ;;  %vm910_vm3 = vcmp.eq.f32.partialorder %v2670_v11, 0.0 }
 0x1fa   : > { %v1946_v23 = vpop.eup %1945  ;;  %v898_v51 = vsel %vm896_vm14, %v897_v33, %v895_v8  ;;  %1753 = vmatmul.mubr.msk.f32.gmra.mrb[8].mxu1 %vm655_vm2, %v1027_v50  ;;  %v1029_v25 = vmul.f32 %v1940_v35, %v2343_v63  ;;  %v911_v56 = vand.u32 2147483648, %v2670_v11  ;;  %vm915_vm4 = vcmp.eq.f32.partialorder %v2684_v49, inf  ;;  %v2764_v63 = vpop.xlane.xlu0 %741 }
 0x1fb   : > { %v1948_v46 = vpop.eup %1947  ;;  %v900_v10 = vmul.f32 %v1946_v23, %v2656_v12  ;;  %1965 = vrsqrt.f32 %v2731_v39  ;;  %v995_v6 = vmax.f32 %v891_v62, 1e-12  ;;  %vm917_vm5 = vcmp.eq.f32.partialorder %v2684_v49, 0.0  ;;  %v2780_v1 = vpop.xlane.xlu1 %744 }
 0x1fc   : > { %v1950_v28 = vpop.eup %1949  ;;  %v918_v34 = vand.u32 2147483648, %v2684_v49  ;;  %1755 = vmatprep.mubr.msk.f32.mxu1 %vm655_vm2, %v1029_v25  ;;  %v1031_v7 = vmul.f32 %v1942_v59, %v2345_v0  ;;  %1967 = vrcp.f32 %v994_v54  ;;  %v996_v27 = vmax.f32 %v898_v51, 1e-12 }
 0x1fd   : > { %v1952_v9 = vpop.eup %1951  ;;  %v902_v31 = vsel %vm901_vm15, %v2656_v12, %v900_v10  ;;  %vm922_vm6 = vcmp.eq.f32.partialorder %v2700_v14, inf  ;;  %vm924_vm7 = vcmp.eq.f32.partialorder %v2700_v14, 0.0  ;;  %1969 = vrsqrt.f32 %v2749_v26 }
 0x1fe   : > { %v1954_v32 = vpop.eup %1953  ;;  %v905_v19 = vsel %vm903_vm0, %v904_v4, %v902_v31  ;;  %v907_v22 = vmul.f32 %v1952_v9, %v2670_v11  ;;  %1756 = vmatmul.mubr.msk.f32.gmra.mrb[10].mxu1 %vm655_vm2, %v1031_v7  ;;  %v925_v55 = vand.u32 2147483648, %v2700_v14  ;;  %v1033_v38 = vmul.f32 %v1944_v2, %v2355_v13  ;;  %v2803_v2 = vpop.xlane.xlu0 %747 }
 0x1ff   : > { %v1956_v0 = vpop.eup %1955  ;;  %v914_v24 = vmul.f32 %v1954_v32, %v2684_v49  ;;  %1971 = vrsqrt.f32 %v2764_v63  ;;  %v997_v33 = vmax.f32 %v905_v19, 1e-12  ;;  %vm929_vm8 = vcmp.eq.f32.partialorder %v2716_v15, inf  ;;  %v2814_v51 = vpop.xlane.xlu1 %750 }
 0x200   : > { %v1958_v12 = vpop.eup %1957  ;;  %1973 = vrcp.f32 %v995_v6  ;;  %v909_v40 = vsel %vm908_vm1, %v2670_v11, %v907_v22  ;;  %1758 = vmatprep.mubr.msk.f32.mxu1 %vm655_vm2, %v1033_v38  ;;  %v1035_v5 = vmul.f32 %v1948_v46, %v2357_v16  ;;  %vm931_vm9 = vcmp.eq.f32.partialorder %v2716_v15, 0.0 }
 0x201   : > { %v1960_v45 = vpop.eup %1959  ;;  %1975 = vrcp.f32 %v996_v27  ;;  %v912_v3 = vsel %vm910_vm3, %v911_v56, %v909_v40  ;;  %v916_v13 = vsel %vm915_vm4, %v2684_v49, %v914_v24  ;;  %v921_v47 = vmul.f32 %v1958_v12, %v2700_v14 }
 0x202   : > { %v1962_v35 = vpop.eup %1961  ;;  %v998_v48 = vmax.f32 %v912_v3, 1e-12  ;;  %v919_v59 = vsel %vm917_vm5, %v918_v34, %v916_v13  ;;  %1977 = vrsqrt.f32 %v2780_v1  ;;  %v932_v50 = vand.u32 2147483648, %v2716_v15  ;;  %1759 = vmatmul.mubr.msk.f32.gmra.mrb[12].mxu1 %vm655_vm2, %v1035_v5 }
 0x203   : > { %v923_v11 = vsel %vm922_vm6, %v2700_v14, %v921_v47  ;;  %v928_v4 = vmul.f32 %v1962_v35, %v2716_v15  ;;  %v1964_v54 = vpop.eup %1963  ;;  %1979 = vrcp.f32 %v997_v33  ;;  %vm936_vm10 = vcmp.eq.f32.partialorder %v2731_v39, inf }
 0x204   : > { %v926_v49 = vsel %vm924_vm7, %v925_v55, %v923_v11  ;;  %vm938_vm11 = vcmp.eq.f32.partialorder %v2731_v39, 0.0  ;;  %1981 = vrcp.f32 %v998_v48  ;;  %v999_v62 = vmax.f32 %v919_v59, 1e-12 }
 0x205   : > { %v1966_v16 = vpop.eup %1965  ;;  %v930_v8 = vsel %vm929_vm8, %v2716_v15, %v928_v4  ;;  %v1037_v23 = vmul.f32 %v1950_v28, %v2367_v29  ;;  %v1000_v25 = vmax.f32 %v926_v49, 1e-12  ;;  %1983 = vrsqrt.f32 %v2803_v2 }
 0x206   : > { %v933_v14 = vsel %vm931_vm9, %v932_v50, %v930_v8  ;;  %v935_v46 = vmul.f32 %v1966_v16, %v2731_v39  ;;  %v1968_v10 = vpop.eup %1967  ;;  %v939_v56 = vand.u32 2147483648, %v2731_v39  ;;  %vm943_vm12 = vcmp.eq.f32.partialorder %v2749_v26, inf }
 0x207   : > { %vm945_vm13 = vcmp.eq.f32.partialorder %v2749_v26, 0.0  ;;  %v946_v6 = vand.u32 2147483648, %v2749_v26  ;;  %1761 = vmatprep.mubr.msk.f32.mxu1 %vm655_vm2, %v1037_v23  ;;  %v1970_v29 = vpop.eup %1969  ;;  %vm950_vm14 = vcmp.eq.f32.partialorder %v2764_v63, inf  ;;  %v1039_v28 = vmul.f32 %v1956_v0, %v2369_v30 }
 0x208   : > { %v937_v15 = vsel %vm936_vm10, %v2731_v39, %v935_v46  ;;  %1985 = vrsqrt.f32 %v2814_v51  ;;  %v1001_v7 = vmax.f32 %v933_v14, 1e-12  ;;  %v942_v27 = vmul.f32 %v1970_v29, %v2749_v26 }
 0x209   : > { %v1972_v34 = vpop.eup %1971  ;;  %1987 = vrcp.f32 %v999_v62  ;;  %v940_v9 = vsel %vm938_vm11, %v939_v56, %v937_v15  ;;  %1762 = vmatmul.mubr.msk.f32.gmra.mrb[14].mxu1 %vm655_vm2, %v1039_v28  ;;  %v1041_v22 = vmul.f32 %v1960_v45, %v2379_v43  ;;  %v953_v24 = vand.u32 2147483648, %v2764_v63 }
 0x20a   : > { %v1974_v31 = vpop.eup %1973  ;;  %1989 = vrcp.f32 %v1000_v25  ;;  %v1002_v32 = vmax.f32 %v940_v9, 1e-12  ;;  %v949_v19 = vmul.f32 %v1972_v34, %v2764_v63  ;;  %v944_v0 = vsel %vm943_vm12, %v2749_v26, %v942_v27 }
 0x20b   : > { %v1976_v30 = vpop.eup %1975  ;;  %v1043_v39 = vmul.f32 %v1964_v54, %v2381_v44  ;;  %v1045_v55 = vmul.f32 %v1968_v10, %v2397_v60  ;;  %v947_v12 = vsel %vm945_vm13, %v946_v6, %v944_v0  ;;  %vm952_vm15 = vcmp.eq.f32.partialorder %v2764_v63, 0.0  ;;  %1764 = vmatprep.mubr.msk.f32.mxu1 %vm655_vm2, %v1041_v22 }
 0x20c   : > { %v1978_v38 = vpop.eup %1977  ;;  %v951_v33 = vsel %vm950_vm14, %v2764_v63, %v949_v19  ;;  %vm957_vm0 = vcmp.eq.f32.partialorder %v2780_v1, inf  ;;  %1991 = vrcp.f32 %v1001_v7  ;;  %v1003_v43 = vmax.f32 %v947_v12, 1e-12 }
 0x20d   : > { %v954_v40 = vsel %vm952_vm15, %v953_v24, %v951_v33  ;;  %v956_v44 = vmul.f32 %v1978_v38, %v2780_v1  ;;  %v1980_v60 = vpop.eup %1979  ;;  %1993 = vrcp.f32 %v1002_v32  ;;  %v960_v26 = vand.u32 2147483648, %v2780_v1  ;;  %1765 = vmatmul.mubr.msk.f32.gmra.mrb[16].mxu1 %vm655_vm2, %v1043_v39 }
 0x20e   : > { %v1004_v45 = vmax.f32 %v954_v40, 1e-12  ;;  %v1047_v3 = vmul.f32 %v1974_v31, %v2400_v61  ;;  %v1982_v13 = vpop.eup %1981  ;;  %vm959_vm1 = vcmp.eq.f32.partialorder %v2780_v1, 0.0  ;;  %1767 = vmatprep.mubr.msk.f32.mxu1 %vm655_vm2, %v1045_v55  ;;  %v1049_v47 = vmul.f32 %v1976_v30, %v2410_v17 }
 0x20f   : > { %v958_v63 = vsel %vm957_vm0, %v2780_v1, %v956_v44  ;;  %v1984_v35 = vpop.eup %1983  ;;  %1995 = vrcp.f32 %v1003_v43  ;;  %vm964_vm3 = vcmp.eq.f32.partialorder %v2803_v2, inf  ;;  %v967_v61 = vand.u32 2147483648, %v2803_v2 }
 0x210   : > { %v961_v48 = vsel %vm959_vm1, %v960_v26, %v958_v63  ;;  %v963_v5 = vmul.f32 %v1984_v35, %v2803_v2  ;;  %1997 = vrcp.f32 %v1004_v45  ;;  %v1051_v1 = vmul.f32 %v1980_v60, %v2413_v18 }
 0x211   : > { %v1005_v59 = vmax.f32 %v961_v48, 1e-12  ;;  %1768 = vmatmul.mubr.msk.f32.gmra.mrb[18].mxu1 %vm655_vm2, %v1047_v3  ;;  %vm966_vm4 = vcmp.eq.f32.partialorder %v2803_v2, 0.0  ;;  %v1053_v54 = vmul.f32 %v1982_v13, %v2429_v36  ;;  %vm971_vm5 = vcmp.eq.f32.partialorder %v2814_v51, inf }
 0x212   : > { %v1986_v11 = vpop.eup %1985  ;;  %v965_v50 = vsel %vm964_vm3, %v2803_v2, %v963_v5  ;;  %1770 = vmatprep.mubr.msk.f32.mxu1 %vm655_vm2, %v1049_v47  ;;  %v974_v62 = vand.u32 2147483648, %v2814_v51  ;;  %vm973_vm6 = vcmp.eq.f32.partialorder %v2814_v51, 0.0 }
 0x213   : > { %v1988_v4 = vpop.eup %1987  ;;  %v970_v17 = vmul.f32 %v1986_v11, %v2814_v51  ;;  %v968_v16 = vsel %vm966_vm4, %v967_v61, %v965_v50  ;;  %1999 = vrcp.f32 %v1005_v59 }
 0x214   : > { %v1990_v49 = vpop.eup %1989  ;;  %v1006_v8 = vmax.f32 %v968_v16, 1e-12  ;;  %v1055_v2 = vmul.f32 %v1988_v4, %v2432_v37 }
 0x215   : > { %v972_v18 = vsel %vm971_vm5, %v2814_v51, %v970_v17  ;;  %1771 = vmatmul.mubr.msk.f32.gmra.mrb[20].mxu1 %vm655_vm2, %v1051_v1  ;;  %v1057_v14 = vmul.f32 %v1990_v49, %v2448_v57 }
 0x216   : > { %v975_v23 = vsel %vm973_vm6, %v974_v62, %v972_v18  ;;  %v1992_v25 = vpop.eup %1991  ;;  %2001 = vrcp.f32 %v1006_v8  ;;  %1773 = vmatprep.mubr.msk.f32.mxu1 %vm655_vm2, %v1053_v54 }
 0x217   : > { %v1007_v36 = vmax.f32 %v975_v23, 1e-12  ;;  %v1994_v46 = vpop.eup %1993  ;;  %v1059_v10 = vmul.f32 %v1992_v25, %v2451_v58 }
 0x218   : > { %v1061_v51 = vmul.f32 %v1994_v46, %v2467_v20 }
 0x219   : > { %2003 = vrcp.f32 %v1007_v36  ;;  %1774 = vmatmul.mubr.msk.f32.gmra.mrb[22].mxu1 %vm655_vm2, %v1055_v2  ;;  %v1996_v56 = vpop.eup %1995 }
 0x21a   : > { %1776 = vmatprep.mubr.msk.f32.mxu1 %vm655_vm2, %v1057_v14  ;;  %v1998_v6 = vpop.eup %1997  ;;  %v1063_v37 = vmul.f32 %v1996_v56, %v2470_v21  ;;  %v2898_v21 = vld [vmem:[%s3018_s4] ss:$0 sm:$0xff] }
 0x21b   : > { %v1065_v57 = vmul.f32 %v1998_v6, %v2480_v41 }
 0x21d   : > { %1777 = vmatmul.mubr.msk.f32.gmra.mrb[24].mxu1 %vm655_vm2, %v1059_v10  ;;  %v2000_v29 = vpop.eup %1999 }
 0x21e   : > { %1779 = vmatprep.mubr.msk.f32.mxu1 %vm655_vm2, %v1061_v51  ;;  %v1067_v58 = vmul.f32 %v2000_v29, %v2483_v42 }
 0x220   : > { %v2002_v15 = vpop.eup %2001 }
 0x221   : > { %1780 = vmatmul.mubr.msk.f32.gmra.mrb[26].mxu1 %vm655_vm2, %v1063_v37  ;;  %v1069_v20 = vmul.f32 %v2002_v15, %v2491_v52 }
 0x222   : > { %1782 = vmatprep.mubr.msk.f32.mxu1 %vm655_vm2, %v1065_v57 }
 0x223   : > { %v2004_v28 = vpop.eup %2003 }
 0x224   : > { %v1071_v34 = vmul.f32 %v2004_v28, %v2493_v53 }
 0x225   : > { %1783 = vmatmul.mubr.msk.f32.gmra.mrb[28].mxu1 %vm655_vm2, %v1067_v58 }
 0x226   : > { %1785 = vmatprep.mubr.msk.f32.mxu1 %vm655_vm2, %v1069_v20 }
 0x229   : > { %1786 = vmatmul.mubr.msk.f32.gmra.mrb[30].mxu1 %vm655_vm2, %v1071_v34  ;;  %vm1408_vm2 = vcmask 261120  }
 0x2b7   : > { %v1742_v41 = vpop.f32.mrb[0].mxu1 }
 0x2b8   : > { %v1255_v42 = vadd.f32 %v1742_v41, %v2898_v21  ;;  %v1249_v52 = vpop.f32.mrb[1].mxu1 }
 0x2b9   : > { %v1250_v53 = vadd.f32 %v2898_v21, %v1249_v52 }
 0x2ba   : > { %1410 = vst.msk [vmem:[%s2903_s15 + $0x8] sm:$0xff] %vm1408_vm2, %v1255_v42 }
 0x2bb   : > { %1409 = vst.msk [vmem:[%s2903_s15] sm:$0xff] %vm1408_vm2, %v1250_v53 }
 0x2bc   : > { %v1745_v7 = vpop.f32.mrb[2].mxu1 }
 0x2bd   : > { %v1265_v9 = vadd.f32 %v1745_v7, %v2898_v21  ;;  %v1259_v27 = vpop.f32.mrb[3].mxu1 }
 0x2be   : > { %v1260_v31 = vadd.f32 %v2898_v21, %v1259_v27 }
 0x2bf   : > { %1412 = vst.msk [vmem:[%s2903_s15 + $0x18] sm:$0xff] %vm1408_vm2, %v1265_v9 }
 0x2c0   : > { %1411 = vst.msk [vmem:[%s2903_s15 + $0x10] sm:$0xff] %vm1408_vm2, %v1260_v31 }
 0x2c3   : > { %v1748_v32 = vpop.f32.mrb[4].mxu1 }
 0x2c4   : > { %v1275_v19 = vadd.f32 %v1748_v32, %v2898_v21  ;;  %v1269_v22 = vpop.f32.mrb[5].mxu1 }
 0x2c5   : > { %v1270_v30 = vadd.f32 %v2898_v21, %v1269_v22 }
 0x2c6   : > { %1414 = vst.msk [vmem:[%s2903_s15 + $0x28] sm:$0xff] %vm1408_vm2, %v1275_v19 }
 0x2c7   : > { %1413 = vst.msk [vmem:[%s2903_s15 + $0x20] sm:$0xff] %vm1408_vm2, %v1270_v30 }
 0x2c9   : > { %v1751_v0 = vpop.f32.mrb[6].mxu1 }
 0x2ca   : > { %v1285_v24 = vadd.f32 %v1751_v0, %v2898_v21  ;;  %v1279_v39 = vpop.f32.mrb[7].mxu1 }
 0x2cb   : > { %v1280_v55 = vadd.f32 %v2898_v21, %v1279_v39 }
 0x2cc   : > { %1416 = vst.msk [vmem:[%s2903_s15 + $0x38] sm:$0xff] %vm1408_vm2, %v1285_v24 }
 0x2cd   : > { %1415 = vst.msk [vmem:[%s2903_s15 + $0x30] sm:$0xff] %vm1408_vm2, %v1280_v55  ;;  %v1754_v38 = vpop.f32.mrb[8].mxu1 }
 0x2ce   : > { %v1295_v12 = vadd.f32 %v1754_v38, %v2898_v21  ;;  %v1289_v33 = vpop.f32.mrb[9].mxu1 }
 0x2cf   : > { %v1290_v43 = vadd.f32 %v2898_v21, %v1289_v33 }
 0x2d0   : > { %1418 = vst.msk [vmem:[%s2903_s15 + $0x48] sm:$0xff] %vm1408_vm2, %v1295_v12 }
 0x2d1   : > { %1417 = vst.msk [vmem:[%s2903_s15 + $0x40] sm:$0xff] %vm1408_vm2, %v1290_v43  ;;  %v1757_v40 = vpop.f32.mrb[10].mxu1 }
 0x2d2   : > { %v1305_v44 = vadd.f32 %v1757_v40, %v2898_v21  ;;  %v1299_v60 = vpop.f32.mrb[11].mxu1 }
 0x2d3   : > { %v1300_v45 = vadd.f32 %v2898_v21, %v1299_v60 }
 0x2d4   : > { %1420 = vst.msk [vmem:[%s2903_s15 + $0x58] sm:$0xff] %vm1408_vm2, %v1305_v44 }
 0x2d5   : > { %1419 = vst.msk [vmem:[%s2903_s15 + $0x50] sm:$0xff] %vm1408_vm2, %v1300_v45  ;;  %v1760_v26 = vpop.f32.mrb[12].mxu1 }
 0x2d6   : > { %v1315_v3 = vadd.f32 %v1760_v26, %v2898_v21  ;;  %v1309_v13 = vpop.f32.mrb[13].mxu1 }
 0x2d7   : > { %v1310_v63 = vadd.f32 %v2898_v21, %v1309_v13 }
 0x2d8   : > { %1422 = vst.msk [vmem:[%s2903_s15 + $0x68] sm:$0xff] %vm1408_vm2, %v1315_v3 }
 0x2d9   : > { %1421 = vst.msk [vmem:[%s2903_s15 + $0x60] sm:$0xff] %vm1408_vm2, %v1310_v63 }
 0x2dc   : > { %v1763_v47 = vpop.f32.mrb[14].mxu1 }
 0x2dd   : > { %v1325_v35 = vadd.f32 %v1763_v47, %v2898_v21  ;;  %v1319_v48 = vpop.f32.mrb[15].mxu1 }
 0x2de   : > { %v1320_v59 = vadd.f32 %v2898_v21, %v1319_v48 }
 0x2df   : > { %1424 = vst.msk [vmem:[%s2903_s15 + $0x78] sm:$0xff] %vm1408_vm2, %v1325_v35 }
 0x2e0   : > { %1423 = vst.msk [vmem:[%s2903_s15 + $0x70] sm:$0xff] %vm1408_vm2, %v1320_v59  ;;  %v1766_v5 = vpop.f32.mrb[16].mxu1 }
 0x2e1   : > { %v1335_v11 = vadd.f32 %v1766_v5, %v2898_v21  ;;  %v1329_v61 = vpop.f32.mrb[17].mxu1 }
 0x2e2   : > { %v1330_v1 = vadd.f32 %v2898_v21, %v1329_v61 }
 0x2e3   : > { %1426 = vst.msk [vmem:[%s2903_s15 + $0x88] sm:$0xff] %vm1408_vm2, %v1335_v11 }
 0x2e4   : > { %1425 = vst.msk [vmem:[%s2903_s15 + $0x80] sm:$0xff] %vm1408_vm2, %v1330_v1  ;;  %v1769_v4 = vpop.f32.mrb[18].mxu1 }
 0x2e5   : > { %v1345_v50 = vadd.f32 %v1769_v4, %v2898_v21  ;;  %v1339_v17 = vpop.f32.mrb[19].mxu1 }
 0x2e6   : > { %v1340_v54 = vadd.f32 %v2898_v21, %v1339_v17 }
 0x2e7   : > { %1428 = vst.msk [vmem:[%s2903_s15 + $0x98] sm:$0xff] %vm1408_vm2, %v1345_v50 }
 0x2e8   : > { %1427 = vst.msk [vmem:[%s2903_s15 + $0x90] sm:$0xff] %vm1408_vm2, %v1340_v54  ;;  %v1772_v49 = vpop.f32.mrb[20].mxu1 }
 0x2e9   : > { %v1355_v16 = vadd.f32 %v1772_v49, %v2898_v21  ;;  %v1349_v62 = vpop.f32.mrb[21].mxu1 }
 0x2ea   : > { %v1350_v8 = vadd.f32 %v2898_v21, %v1349_v62 }
 0x2eb   : > { %1430 = vst.msk [vmem:[%s2903_s15 + $0xa8] sm:$0xff] %vm1408_vm2, %v1355_v16 }
 0x2ec   : > { %1429 = vst.msk [vmem:[%s2903_s15 + $0xa0] sm:$0xff] %vm1408_vm2, %v1350_v8  ;;  %v1775_v18 = vpop.f32.mrb[22].mxu1 }
 0x2ed   : > { %v1365_v23 = vadd.f32 %v1775_v18, %v2898_v21  ;;  %v1359_v2 = vpop.f32.mrb[23].mxu1 }
 0x2ee   : > { %v1360_v25 = vadd.f32 %v2898_v21, %v1359_v2 }
 0x2ef   : > { %1432 = vst.msk [vmem:[%s2903_s15 + $0xb8] sm:$0xff] %vm1408_vm2, %v1365_v23 }
 0x2f0   : > { %1431 = vst.msk [vmem:[%s2903_s15 + $0xb0] sm:$0xff] %vm1408_vm2, %v1360_v25  ;;  %v1778_v36 = vpop.f32.mrb[24].mxu1 }
 0x2f1   : > { %v1375_v14 = vadd.f32 %v1778_v36, %v2898_v21  ;;  %v1369_v46 = vpop.f32.mrb[25].mxu1 }
 0x2f2   : > { %v1370_v10 = vadd.f32 %v2898_v21, %v1369_v46 }
 0x2f3   : > { %1434 = vst.msk [vmem:[%s2903_s15 + $0xc8] sm:$0xff] %vm1408_vm2, %v1375_v14 }
 0x2f4   : > { %1433 = vst.msk [vmem:[%s2903_s15 + $0xc0] sm:$0xff] %vm1408_vm2, %v1370_v10  ;;  %v1781_v56 = vpop.f32.mrb[26].mxu1 }
 0x2f5   : > { %v1385_v51 = vadd.f32 %v1781_v56, %v2898_v21  ;;  %v1379_v6 = vpop.f32.mrb[27].mxu1 }
 0x2f6   : > { %v1380_v37 = vadd.f32 %v2898_v21, %v1379_v6 }
 0x2f7   : > { %1436 = vst.msk [vmem:[%s2903_s15 + $0xd8] sm:$0xff] %vm1408_vm2, %v1385_v51 }
 0x2f8   : > { %1435 = vst.msk [vmem:[%s2903_s15 + $0xd0] sm:$0xff] %vm1408_vm2, %v1380_v37  ;;  %v1784_v29 = vpop.f32.mrb[28].mxu1 }
 0x2f9   : > { %v1395_v57 = vadd.f32 %v1784_v29, %v2898_v21  ;;  %v1389_v15 = vpop.f32.mrb[29].mxu1 }
 0x2fa   : > { %v1390_v58 = vadd.f32 %v2898_v21, %v1389_v15 }
 0x2fb   : > { %1438 = vst.msk [vmem:[%s2903_s15 + $0xe8] sm:$0xff] %vm1408_vm2, %v1395_v57 }
 0x2fc   : > { %1437 = vst.msk [vmem:[%s2903_s15 + $0xe0] sm:$0xff] %vm1408_vm2, %v1390_v58  ;;  %v1787_v28 = vpop.f32.mrb[30].mxu1 }
 0x2fd   : > { %v1405_v20 = vadd.f32 %v1787_v28, %v2898_v21  ;;  %v1399_v34 = vpop.f32.mrb[31].mxu1 }
 0x2fe   : > { %v1400_v41 = vadd.f32 %v2898_v21, %v1399_v34 }
 0x2ff   : > { %1440 = vst.msk [vmem:[%s2903_s15 + $0xf8] sm:$0xff] %vm1408_vm2, %v1405_v20 }
 0x300   : > { %1439 = vst.msk [vmem:[%s2903_s15 + $0xf0] sm:$0xff] %vm1408_vm2, %v1400_v41 }
 0x301 PF: > { %p15_p8 = scmp.ge.s32.totalorder %s2124_s23, 4   ;;  %s3023_s18 = smov %s2061_s19 }
 0x302   : > { %s3024_s19 = smov %s2065_s20  ;;  %s3025_s20 = smov %s2134_s26 }
 0x303   : > { %s3026_s21 = smov %s2124_s23  ;;  %17 = sbr.rel (!%p15_p8) target bundleno = 3 (0x3), region = 80 }
 0x30a   :  { %1463 = vsyncpa [#allocation3], 1 }
 0x30b   :  { %1465 = vsyncpa [#allocation3 + $0x1], 1 }

</bundles_post_ra>
